<compile_context>
chip_gen: v5e
topology: v5e:2x2
jax: 0.10.0
libtpu: 0.0.40
codegen_flags: <defaults>
</compile_context>

<pallas_src>
import functools

import jax
import jax.numpy as jnp
from jax import lax
from jax.experimental import pallas as pl
from jax.experimental.pallas import tpu as pltpu


# ---------------------------------------------------------------------------
# Fused kernel: maxpool(2) -> conv3x3x3+bias+relu -> conv3x3x3+bias+relu
# One grid step per batch element; everything stays in VMEM.
# ---------------------------------------------------------------------------
def _fused_downsample_kernel(x_ref, w1_ref, b1_ref, w2_ref, b2_ref, o_ref,
                             pad1_ref, pad2_ref, *, dims):
    # x_ref : (1, 2, 2, 2, Dp, Hp, Wp*Cin)  pooling-window halves as leading dims
    # w1_ref: (9, (Wp+2)*Cin,  Wp*Cmid) bf16  (kw tap folded into a banded matrix)
    # b1_ref: (1, Wp*Cmid) f32
    # w2_ref: (9, (Wp+2)*Cmid, Wp*Cout) bf16
    # b2_ref: (1, Wp*Cout) f32
    # o_ref : (1, Dp, Hp, Wp*Cout)
    # pad1_ref / pad2_ref: zero-padded activation scratch volumes (VMEM, f32)
    Dp, Hp, Wp, Cin, Cmid, Cout = dims
    rows = Dp * Hp

    # ---- MaxPool3d(kernel_size=2, stride=2): 8-way max over window halves ----
    p = x_ref[0, 0, 0, 0]
    for i in range(2):
        for j in range(2):
            for k in range(2):
                if (i, j, k) != (0, 0, 0):
                    p = jnp.maximum(p, x_ref[0, i, j, k])   # (Dp, Hp, Wp*Cin)

    # ---- padded activation volumes (conv zero padding lives in the scratch) --
    pad1_ref[...] = jnp.zeros(pad1_ref.shape, pad1_ref.dtype)
    pad2_ref[...] = jnp.zeros(pad2_ref.shape, pad2_ref.dtype)
    pad1_ref[1:1 + Dp, 1:1 + Hp, Cin:Cin + Wp * Cin] = p

    # ---- Conv1 (3x3x3, pad=1) + folded BN + ReLU ------------------------------
    # W-tap dimension is inside the matmul: K=(Wp+2)*Cin, N=Wp*Cmid -> 9 dots.
    acc1 = jnp.zeros((rows, Wp * Cmid), jnp.float32)
    for kd in range(3):
        for kh in range(3):
            t = kd * 3 + kh
            patch = pad1_ref[kd:kd + Dp, kh:kh + Hp, :]
            patch = patch.reshape(rows, (Wp + 2) * Cin).astype(jnp.bfloat16)
            acc1 = acc1 + jnp.dot(patch, w1_ref[t],
                                  preferred_element_type=jnp.float32)
    h1 = jnp.maximum(acc1 + b1_ref[...], 0.0)               # (rows, Wp*Cmid) f32
    pad2_ref[1:1 + Dp, 1:1 + Hp, Cmid:Cmid + Wp * Cmid] = (
        h1.reshape(Dp, Hp, Wp * Cmid))

    # ---- Conv2 (3x3x3, pad=1) + folded BN + ReLU ------------------------------
    acc2 = jnp.zeros((rows, Wp * Cout), jnp.float32)
    for kd in range(3):
        for kh in range(3):
            t = kd * 3 + kh
            patch = pad2_ref[kd:kd + Dp, kh:kh + Hp, :]
            patch = patch.reshape(rows, (Wp + 2) * Cmid).astype(jnp.bfloat16)
            acc2 = acc2 + jnp.dot(patch, w2_ref[t],
                                  preferred_element_type=jnp.float32)
    out = jnp.maximum(acc2 + b2_ref[...], 0.0)
    o_ref[...] = out.reshape(1, Dp, Hp, Wp * Cout).astype(o_ref.dtype)


# ---------------------------------------------------------------------------
# Parameter setup / BN folding / banded-weight construction (plain-JAX glue)
# ---------------------------------------------------------------------------
def fold_conv_bn(w_oidhw, b, gamma, beta, mean, var, eps=1e-5):
    # PyTorch Conv3d weight (Cout, Cin, 3, 3, 3) -> DHWIO (3, 3, 3, Cin, Cout)
    scale = gamma / jnp.sqrt(var + eps)                     # (Cout,)
    w_dhwio = jnp.transpose(w_oidhw, (2, 3, 4, 1, 0))
    w_eff = w_dhwio * scale                                 # broadcast over Cout
    b_eff = (b - mean) * scale + beta
    return w_eff, b_eff


def _band_weights(w_dhwio, Wp):
    # (3,3,3,Ci,Co) -> (9, (Wp+2)*Ci, Wp*Co). The kw tap becomes a block-banded
    # (Toeplitz) structure over the flattened (w, channel) lane dimension:
    #   big[(kd,kh), (w_in,ci), (w_out,co)] = w[kd,kh, w_in-w_out, ci, co]
    # for 0 <= w_in - w_out <= 2, else 0.
    _, _, _, Ci, Co = w_dhwio.shape
    w_in = jnp.arange(Wp + 2)[None, :, None]
    w_out = jnp.arange(Wp)[None, None, :]
    kw = jnp.arange(3)[:, None, None]
    sel = (w_in == w_out + kw).astype(w_dhwio.dtype)        # (3, Wp+2, Wp)
    big = jnp.einsum('kpq,dhkio->dhpiqo', sel, w_dhwio)     # (3,3,Wp+2,Ci,Wp,Co)
    return big.reshape(9, (Wp + 2) * Ci, Wp * Co)


def init_params(key, in_channels, out_channels):
    k1, k2, k3, k4 = jax.random.split(key, 4)
    inter = out_channels  # twoConvs3D(in, out, inter=out) as used by downSample
    return {
        "w1": jax.random.normal(k1, (inter, in_channels, 3, 3, 3), jnp.float32) * 0.1,
        "b1": jax.random.normal(k2, (inter,), jnp.float32) * 0.1,
        "w2": jax.random.normal(k3, (out_channels, inter, 3, 3, 3), jnp.float32) * 0.1,
        "b2": jax.random.normal(k4, (out_channels,), jnp.float32) * 0.1,
        "g1": jnp.ones((inter,), jnp.float32),
        "be1": jnp.zeros((inter,), jnp.float32),
        "m1": jnp.zeros((inter,), jnp.float32),
        "v1": jnp.ones((inter,), jnp.float32),
        "g2": jnp.ones((out_channels,), jnp.float32),
        "be2": jnp.zeros((out_channels,), jnp.float32),
        "m2": jnp.zeros((out_channels,), jnp.float32),
        "v2": jnp.ones((out_channels,), jnp.float32),
    }


# ---------------------------------------------------------------------------
# Public wrapper: accepts / returns PyTorch NCDHW tensors.
# ---------------------------------------------------------------------------
def downsample_forward(x_ncdhw, params):
    w1_eff, b1_eff = fold_conv_bn(params["w1"], params["b1"], params["g1"],
                                  params["be1"], params["m1"], params["v1"])
    w2_eff, b2_eff = fold_conv_bn(params["w2"], params["b2"], params["g2"],
                                  params["be2"], params["m2"], params["v2"])

    N, Cin, D, H, W = x_ncdhw.shape
    assert D % 2 == 0 and H % 2 == 0 and W % 2 == 0, "even spatial dims expected"
    Dp, Hp, Wp = D // 2, H // 2, W // 2
    Cmid = w1_eff.shape[-1]
    Cout = w2_eff.shape[-1]

    # NCDHW -> (N, d2, h2, w2, Dp, Hp, Wp*Cin): the 2x2x2 pooling-window halves
    # become leading dims (kernel maxes over them) and (W, C) merge into one
    # lane-dense minor dim so the convs run as banded matmuls.
    # TODO(synk): the boundary NCDHW<->channels-last transposes could go away
    # entirely if the surrounding model used channels-last tensors.
    x = x_ncdhw.reshape(N, Cin, Dp, 2, Hp, 2, Wp, 2)
    x = jnp.transpose(x, (0, 3, 5, 7, 2, 4, 6, 1))
    x = x.reshape(N, 2, 2, 2, Dp, Hp, Wp * Cin)

    w1 = _band_weights(w1_eff, Wp).astype(jnp.bfloat16)     # (9,(Wp+2)*Cin, Wp*Cmid)
    w2 = _band_weights(w2_eff, Wp).astype(jnp.bfloat16)     # (9,(Wp+2)*Cmid,Wp*Cout)
    b1 = jnp.tile(b1_eff, (Wp,)).reshape(1, Wp * Cmid).astype(jnp.float32)
    b2 = jnp.tile(b2_eff, (Wp,)).reshape(1, Wp * Cout).astype(jnp.float32)

    rows = Dp * Hp
    flops = int(2 * N * 9 * rows * ((Wp + 2) * Cin * Wp * Cmid
                                    + (Wp + 2) * Cmid * Wp * Cout))
    bytes_accessed = int(x.size * x.dtype.itemsize + N * rows * Wp * Cout * 4
                         + w1.size * 2 + w2.size * 2 + b1.size * 4 + b2.size * 4)

    kernel = functools.partial(_fused_downsample_kernel,
                               dims=(Dp, Hp, Wp, Cin, Cmid, Cout))

    out = pl.pallas_call(
        kernel,
        out_shape=jax.ShapeDtypeStruct((N, Dp, Hp, Wp * Cout), x_ncdhw.dtype),
        grid=(N,),
        in_specs=[
            pl.BlockSpec((1, 2, 2, 2, Dp, Hp, Wp * Cin),
                         lambda n: (n, 0, 0, 0, 0, 0, 0)),
            pl.BlockSpec((9, (Wp + 2) * Cin, Wp * Cmid), lambda n: (0, 0, 0)),
            pl.BlockSpec((1, Wp * Cmid), lambda n: (0, 0)),
            pl.BlockSpec((9, (Wp + 2) * Cmid, Wp * Cout), lambda n: (0, 0, 0)),
            pl.BlockSpec((1, Wp * Cout), lambda n: (0, 0)),
        ],
        out_specs=pl.BlockSpec((1, Dp, Hp, Wp * Cout), lambda n: (n, 0, 0, 0)),
        scratch_shapes=[
            pltpu.VMEM((Dp + 2, Hp + 2, (Wp + 2) * Cin), jnp.float32),
            pltpu.VMEM((Dp + 2, Hp + 2, (Wp + 2) * Cmid), jnp.float32),
        ],
        compiler_params=pltpu.CompilerParams(
            dimension_semantics=("parallel",)),
        cost_estimate=pl.CostEstimate(flops=flops, transcendentals=0,
                                      bytes_accessed=bytes_accessed),
    )(x, w1, b1, w2, b2)

    out = out.reshape(N, Dp, Hp, Wp, Cout)
    return jnp.transpose(out, (0, 4, 1, 2, 3))              # channels-last -> NCDHW


# ---------------------------------------------------------------------------
# Pure-JAX reference (same bf16-operand / f32-accumulate rounding points)
# ---------------------------------------------------------------------------
def reference_forward(x_ncdhw, params):
    w1_eff, b1_eff = fold_conv_bn(params["w1"], params["b1"], params["g1"],
                                  params["be1"], params["m1"], params["v1"])
    w2_eff, b2_eff = fold_conv_bn(params["w2"], params["b2"], params["g2"],
                                  params["be2"], params["m2"], params["v2"])
    x = jnp.transpose(x_ncdhw, (0, 2, 3, 4, 1))
    x = lax.reduce_window(x, -jnp.inf, lax.max,
                          window_dimensions=(1, 2, 2, 2, 1),
                          window_strides=(1, 2, 2, 2, 1),
                          padding="VALID")

    def conv(x, w, b):
        y = lax.conv_general_dilated(
            x.astype(jnp.bfloat16), w.astype(jnp.bfloat16),
            window_strides=(1, 1, 1),
            padding=((1, 1), (1, 1), (1, 1)),
            dimension_numbers=("NDHWC", "DHWIO", "NDHWC"),
            preferred_element_type=jnp.float32)
        return jnp.maximum(y + b, 0.0)

    x = conv(x, w1_eff, b1_eff)
    x = conv(x, w2_eff, b2_eff)
    return jnp.transpose(x, (0, 4, 1, 2, 3))


if __name__ == "__main__":
    key = jax.random.PRNGKey(0)
    kx, kp = jax.random.split(key)

    N, Cin, Cout, S = 2, 4, 8, 16
    x = jax.random.normal(kx, (N, Cin, S, S, S), jnp.float32)   # NCDHW
    params = init_params(kp, Cin, Cout)

    out = jax.block_until_ready(downsample_forward(x, params))
    assert out.shape == (N, Cout, S // 2, S // 2, S // 2), out.shape

    ref = jax.block_until_ready(reference_forward(x, params))
    assert jnp.allclose(out, ref, rtol=2e-2, atol=2e-2), (
        float(jnp.max(jnp.abs(out - ref))))

    print("KERNEL_OK")
</pallas_src>

<mosaic_0001>
module attributes {stable_mosaic.version = 11 : i64} {
  func.func @_fused_downsample_kernel(%arg0: i32, %arg1: memref<1x2x2x2x8x8x32xf32, #tpu.memory_space<vmem>>, %arg2: memref<9x40x64xbf16, #tpu.memory_space<vmem>>, %arg3: memref<1x64xf32, #tpu.memory_space<vmem>>, %arg4: memref<9x80x64xbf16, #tpu.memory_space<vmem>>, %arg5: memref<1x64xf32, #tpu.memory_space<vmem>>, %arg6: memref<1x8x8x64xf32, #tpu.memory_space<vmem>>, %arg7: memref<10x10x40xf32, #tpu.memory_space<vmem>>, %arg8: memref<10x10x80xf32, #tpu.memory_space<vmem>>) attributes {dimension_semantics = [#tpu.dimension_semantics<parallel>], iteration_bounds = array<i64: 2>, scalar_prefetch = 0 : i64, scratch_operands = 2 : i64, tpu.core_type = #tpu.core_type<tc>, window_params = [{transform_indices = @transform_0, window_bounds = array<i64: 1, 2, 2, 2, 8, 8, 32>}, {pipeline_mode = #tpu.pipeline_mode<synchronous>, transform_indices = @transform_1, window_bounds = array<i64: 9, 40, 64>}, {pipeline_mode = #tpu.pipeline_mode<synchronous>, transform_indices = @transform_2, window_bounds = array<i64: 1, 64>}, {pipeline_mode = #tpu.pipeline_mode<synchronous>, transform_indices = @transform_3, window_bounds = array<i64: 9, 80, 64>}, {pipeline_mode = #tpu.pipeline_mode<synchronous>, transform_indices = @transform_4, window_bounds = array<i64: 1, 64>}, {transform_indices = @transform_5, window_bounds = array<i64: 1, 8, 8, 64>}]} {
    %c0 = arith.constant 0 : index
    %c0_0 = arith.constant 0 : index
    %c0_1 = arith.constant 0 : index
    %c0_2 = arith.constant 0 : index
    %c0_3 = arith.constant 0 : index
    %c0_4 = arith.constant 0 : index
    %c0_5 = arith.constant 0 : index
    %0 = vector.load %arg1[%c0, %c0_0, %c0_1, %c0_2, %c0_3, %c0_4, %c0_5] : memref<1x2x2x2x8x8x32xf32, #tpu.memory_space<vmem>>, vector<1x1x1x1x8x8x32xf32>
    %1 = vector.shape_cast %0 : vector<1x1x1x1x8x8x32xf32> to vector<8x8x32xf32>
    %c0_6 = arith.constant 0 : index
    %c0_7 = arith.constant 0 : index
    %c0_8 = arith.constant 0 : index
    %c1 = arith.constant 1 : index
    %c0_9 = arith.constant 0 : index
    %c0_10 = arith.constant 0 : index
    %c0_11 = arith.constant 0 : index
    %2 = vector.load %arg1[%c0_6, %c0_7, %c0_8, %c1, %c0_9, %c0_10, %c0_11] : memref<1x2x2x2x8x8x32xf32, #tpu.memory_space<vmem>>, vector<1x1x1x1x8x8x32xf32>
    %3 = vector.shape_cast %2 : vector<1x1x1x1x8x8x32xf32> to vector<8x8x32xf32>
    %4 = arith.maximumf %1, %3 : vector<8x8x32xf32>
    %c0_12 = arith.constant 0 : index
    %c0_13 = arith.constant 0 : index
    %c1_14 = arith.constant 1 : index
    %c0_15 = arith.constant 0 : index
    %c0_16 = arith.constant 0 : index
    %c0_17 = arith.constant 0 : index
    %c0_18 = arith.constant 0 : index
    %5 = vector.load %arg1[%c0_12, %c0_13, %c1_14, %c0_15, %c0_16, %c0_17, %c0_18] : memref<1x2x2x2x8x8x32xf32, #tpu.memory_space<vmem>>, vector<1x1x1x1x8x8x32xf32>
    %6 = vector.shape_cast %5 : vector<1x1x1x1x8x8x32xf32> to vector<8x8x32xf32>
    %7 = arith.maximumf %4, %6 : vector<8x8x32xf32>
    %c0_19 = arith.constant 0 : index
    %c0_20 = arith.constant 0 : index
    %c1_21 = arith.constant 1 : index
    %c1_22 = arith.constant 1 : index
    %c0_23 = arith.constant 0 : index
    %c0_24 = arith.constant 0 : index
    %c0_25 = arith.constant 0 : index
    %8 = vector.load %arg1[%c0_19, %c0_20, %c1_21, %c1_22, %c0_23, %c0_24, %c0_25] : memref<1x2x2x2x8x8x32xf32, #tpu.memory_space<vmem>>, vector<1x1x1x1x8x8x32xf32>
    %9 = vector.shape_cast %8 : vector<1x1x1x1x8x8x32xf32> to vector<8x8x32xf32>
    %10 = arith.maximumf %7, %9 : vector<8x8x32xf32>
    %c0_26 = arith.constant 0 : index
    %c1_27 = arith.constant 1 : index
    %c0_28 = arith.constant 0 : index
    %c0_29 = arith.constant 0 : index
    %c0_30 = arith.constant 0 : index
    %c0_31 = arith.constant 0 : index
    %c0_32 = arith.constant 0 : index
    %11 = vector.load %arg1[%c0_26, %c1_27, %c0_28, %c0_29, %c0_30, %c0_31, %c0_32] : memref<1x2x2x2x8x8x32xf32, #tpu.memory_space<vmem>>, vector<1x1x1x1x8x8x32xf32>
    %12 = vector.shape_cast %11 : vector<1x1x1x1x8x8x32xf32> to vector<8x8x32xf32>
    %13 = arith.maximumf %10, %12 : vector<8x8x32xf32>
    %c0_33 = arith.constant 0 : index
    %c1_34 = arith.constant 1 : index
    %c0_35 = arith.constant 0 : index
    %c1_36 = arith.constant 1 : index
    %c0_37 = arith.constant 0 : index
    %c0_38 = arith.constant 0 : index
    %c0_39 = arith.constant 0 : index
    %14 = vector.load %arg1[%c0_33, %c1_34, %c0_35, %c1_36, %c0_37, %c0_38, %c0_39] : memref<1x2x2x2x8x8x32xf32, #tpu.memory_space<vmem>>, vector<1x1x1x1x8x8x32xf32>
    %15 = vector.shape_cast %14 : vector<1x1x1x1x8x8x32xf32> to vector<8x8x32xf32>
    %16 = arith.maximumf %13, %15 : vector<8x8x32xf32>
    %c0_40 = arith.constant 0 : index
    %c1_41 = arith.constant 1 : index
    %c1_42 = arith.constant 1 : index
    %c0_43 = arith.constant 0 : index
    %c0_44 = arith.constant 0 : index
    %c0_45 = arith.constant 0 : index
    %c0_46 = arith.constant 0 : index
    %17 = vector.load %arg1[%c0_40, %c1_41, %c1_42, %c0_43, %c0_44, %c0_45, %c0_46] : memref<1x2x2x2x8x8x32xf32, #tpu.memory_space<vmem>>, vector<1x1x1x1x8x8x32xf32>
    %18 = vector.shape_cast %17 : vector<1x1x1x1x8x8x32xf32> to vector<8x8x32xf32>
    %19 = arith.maximumf %16, %18 : vector<8x8x32xf32>
    %c0_47 = arith.constant 0 : index
    %c1_48 = arith.constant 1 : index
    %c1_49 = arith.constant 1 : index
    %c1_50 = arith.constant 1 : index
    %c0_51 = arith.constant 0 : index
    %c0_52 = arith.constant 0 : index
    %c0_53 = arith.constant 0 : index
    %20 = vector.load %arg1[%c0_47, %c1_48, %c1_49, %c1_50, %c0_51, %c0_52, %c0_53] : memref<1x2x2x2x8x8x32xf32, #tpu.memory_space<vmem>>, vector<1x1x1x1x8x8x32xf32>
    %21 = vector.shape_cast %20 : vector<1x1x1x1x8x8x32xf32> to vector<8x8x32xf32>
    %22 = arith.maximumf %19, %21 : vector<8x8x32xf32>
    %cst = arith.constant 0.000000e+00 : f32
    %23 = vector.broadcast %cst : f32 to vector<10x10x40xf32>
    %c0_54 = arith.constant 0 : index
    %c0_55 = arith.constant 0 : index
    %c0_56 = arith.constant 0 : index
    %24 = vector.load %arg7[%c0_54, %c0_55, %c0_56] : memref<10x10x40xf32, #tpu.memory_space<vmem>>, vector<10x10x40xf32>
    tpu.vector_store %arg7[%c0_54, %c0_55, %c0_56], %23 {strides = array<i32>} : memref<10x10x40xf32, #tpu.memory_space<vmem>>, vector<10x10x40xf32>,
    %cst_57 = arith.constant 0.000000e+00 : f32
    %25 = vector.broadcast %cst_57 : f32 to vector<10x10x80xf32>
    %c0_58 = arith.constant 0 : index
    %c0_59 = arith.constant 0 : index
    %c0_60 = arith.constant 0 : index
    %26 = vector.load %arg8[%c0_58, %c0_59, %c0_60] : memref<10x10x80xf32, #tpu.memory_space<vmem>>, vector<10x10x80xf32>
    tpu.vector_store %arg8[%c0_58, %c0_59, %c0_60], %25 {strides = array<i32>} : memref<10x10x80xf32, #tpu.memory_space<vmem>>, vector<10x10x80xf32>,
    %c1_61 = arith.constant 1 : index
    %c1_62 = arith.constant 1 : index
    %c4 = arith.constant 4 : index
    %27 = vector.load %arg7[%c1_61, %c1_62, %c4] : memref<10x10x40xf32, #tpu.memory_space<vmem>>, vector<8x8x32xf32>
    tpu.vector_store %arg7[%c1_61, %c1_62, %c4], %22 {strides = array<i32>} : memref<10x10x40xf32, #tpu.memory_space<vmem>>, vector<8x8x32xf32>,
    %cst_63 = arith.constant 0.000000e+00 : f32
    %28 = vector.broadcast %cst_63 : f32 to vector<64x64xf32>
    %c0_64 = arith.constant 0 : index
    %c0_65 = arith.constant 0 : index
    %c0_66 = arith.constant 0 : index
    %29 = vector.load %arg7[%c0_64, %c0_65, %c0_66] : memref<10x10x40xf32, #tpu.memory_space<vmem>>, vector<8x8x40xf32>
    %30 = vector.shape_cast %29 : vector<8x8x40xf32> to vector<64x40xf32>
    %31 = arith.truncf %30 : vector<64x40xf32> to vector<64x40xbf16>
    %c0_67 = arith.constant 0 : index
    %c0_68 = arith.constant 0 : index
    %c0_69 = arith.constant 0 : index
    %32 = vector.load %arg2[%c0_67, %c0_68, %c0_69] : memref<9x40x64xbf16, #tpu.memory_space<vmem>>, vector<1x40x64xbf16>
    %33 = vector.shape_cast %32 : vector<1x40x64xbf16> to vector<40x64xbf16>
    %cst_70 = arith.constant dense<0.000000e+00> : vector<64x64xf32>
    %34 = tpu.matmul %31, %33, %cst_70 {dimension_numbers = #tpu.dot_dimension_numbers<[1], [0], [0], [1], [0, 0, 1, 1], [], []>} : vector<64x40xbf16>, vector<40x64xbf16>, vector<64x64xf32> -> vector<64x64xf32>
    %35 = arith.addf %28, %34 : vector<64x64xf32>
    %c0_71 = arith.constant 0 : index
    %c1_72 = arith.constant 1 : index
    %c0_73 = arith.constant 0 : index
    %36 = vector.load %arg7[%c0_71, %c1_72, %c0_73] : memref<10x10x40xf32, #tpu.memory_space<vmem>>, vector<8x8x40xf32>
    %37 = vector.shape_cast %36 : vector<8x8x40xf32> to vector<64x40xf32>
    %38 = arith.truncf %37 : vector<64x40xf32> to vector<64x40xbf16>
    %c1_74 = arith.constant 1 : index
    %c0_75 = arith.constant 0 : index
    %c0_76 = arith.constant 0 : index
    %39 = vector.load %arg2[%c1_74, %c0_75, %c0_76] : memref<9x40x64xbf16, #tpu.memory_space<vmem>>, vector<1x40x64xbf16>
    %40 = vector.shape_cast %39 : vector<1x40x64xbf16> to vector<40x64xbf16>
    %cst_77 = arith.constant dense<0.000000e+00> : vector<64x64xf32>
    %41 = tpu.matmul %38, %40, %cst_77 {dimension_numbers = #tpu.dot_dimension_numbers<[1], [0], [0], [1], [0, 0, 1, 1], [], []>} : vector<64x40xbf16>, vector<40x64xbf16>, vector<64x64xf32> -> vector<64x64xf32>
    %42 = arith.addf %35, %41 : vector<64x64xf32>
    %c0_78 = arith.constant 0 : index
    %c2 = arith.constant 2 : index
    %c0_79 = arith.constant 0 : index
    %43 = vector.load %arg7[%c0_78, %c2, %c0_79] : memref<10x10x40xf32, #tpu.memory_space<vmem>>, vector<8x8x40xf32>
    %44 = vector.shape_cast %43 : vector<8x8x40xf32> to vector<64x40xf32>
    %45 = arith.truncf %44 : vector<64x40xf32> to vector<64x40xbf16>
    %c2_80 = arith.constant 2 : index
    %c0_81 = arith.constant 0 : index
    %c0_82 = arith.constant 0 : index
    %46 = vector.load %arg2[%c2_80, %c0_81, %c0_82] : memref<9x40x64xbf16, #tpu.memory_space<vmem>>, vector<1x40x64xbf16>
    %47 = vector.shape_cast %46 : vector<1x40x64xbf16> to vector<40x64xbf16>
    %cst_83 = arith.constant dense<0.000000e+00> : vector<64x64xf32>
    %48 = tpu.matmul %45, %47, %cst_83 {dimension_numbers = #tpu.dot_dimension_numbers<[1], [0], [0], [1], [0, 0, 1, 1], [], []>} : vector<64x40xbf16>, vector<40x64xbf16>, vector<64x64xf32> -> vector<64x64xf32>
    %49 = arith.addf %42, %48 : vector<64x64xf32>
    %c1_84 = arith.constant 1 : index
    %c0_85 = arith.constant 0 : index
    %c0_86 = arith.constant 0 : index
    %50 = vector.load %arg7[%c1_84, %c0_85, %c0_86] : memref<10x10x40xf32, #tpu.memory_space<vmem>>, vector<8x8x40xf32>
    %51 = vector.shape_cast %50 : vector<8x8x40xf32> to vector<64x40xf32>
    %52 = arith.truncf %51 : vector<64x40xf32> to vector<64x40xbf16>
    %c3 = arith.constant 3 : index
    %c0_87 = arith.constant 0 : index
    %c0_88 = arith.constant 0 : index
    %53 = vector.load %arg2[%c3, %c0_87, %c0_88] : memref<9x40x64xbf16, #tpu.memory_space<vmem>>, vector<1x40x64xbf16>
    %54 = vector.shape_cast %53 : vector<1x40x64xbf16> to vector<40x64xbf16>
    %cst_89 = arith.constant dense<0.000000e+00> : vector<64x64xf32>
    %55 = tpu.matmul %52, %54, %cst_89 {dimension_numbers = #tpu.dot_dimension_numbers<[1], [0], [0], [1], [0, 0, 1, 1], [], []>} : vector<64x40xbf16>, vector<40x64xbf16>, vector<64x64xf32> -> vector<64x64xf32>
    %56 = arith.addf %49, %55 : vector<64x64xf32>
    %c1_90 = arith.constant 1 : index
    %c1_91 = arith.constant 1 : index
    %c0_92 = arith.constant 0 : index
    %57 = vector.load %arg7[%c1_90, %c1_91, %c0_92] : memref<10x10x40xf32, #tpu.memory_space<vmem>>, vector<8x8x40xf32>
    %58 = vector.shape_cast %57 : vector<8x8x40xf32> to vector<64x40xf32>
    %59 = arith.truncf %58 : vector<64x40xf32> to vector<64x40xbf16>
    %c4_93 = arith.constant 4 : index
    %c0_94 = arith.constant 0 : index
    %c0_95 = arith.constant 0 : index
    %60 = vector.load %arg2[%c4_93, %c0_94, %c0_95] : memref<9x40x64xbf16, #tpu.memory_space<vmem>>, vector<1x40x64xbf16>
    %61 = vector.shape_cast %60 : vector<1x40x64xbf16> to vector<40x64xbf16>
    %cst_96 = arith.constant dense<0.000000e+00> : vector<64x64xf32>
    %62 = tpu.matmul %59, %61, %cst_96 {dimension_numbers = #tpu.dot_dimension_numbers<[1], [0], [0], [1], [0, 0, 1, 1], [], []>} : vector<64x40xbf16>, vector<40x64xbf16>, vector<64x64xf32> -> vector<64x64xf32>
    %63 = arith.addf %56, %62 : vector<64x64xf32>
    %c1_97 = arith.constant 1 : index
    %c2_98 = arith.constant 2 : index
    %c0_99 = arith.constant 0 : index
    %64 = vector.load %arg7[%c1_97, %c2_98, %c0_99] : memref<10x10x40xf32, #tpu.memory_space<vmem>>, vector<8x8x40xf32>
    %65 = vector.shape_cast %64 : vector<8x8x40xf32> to vector<64x40xf32>
    %66 = arith.truncf %65 : vector<64x40xf32> to vector<64x40xbf16>
    %c5 = arith.constant 5 : index
    %c0_100 = arith.constant 0 : index
    %c0_101 = arith.constant 0 : index
    %67 = vector.load %arg2[%c5, %c0_100, %c0_101] : memref<9x40x64xbf16, #tpu.memory_space<vmem>>, vector<1x40x64xbf16>
    %68 = vector.shape_cast %67 : vector<1x40x64xbf16> to vector<40x64xbf16>
    %cst_102 = arith.constant dense<0.000000e+00> : vector<64x64xf32>
    %69 = tpu.matmul %66, %68, %cst_102 {dimension_numbers = #tpu.dot_dimension_numbers<[1], [0], [0], [1], [0, 0, 1, 1], [], []>} : vector<64x40xbf16>, vector<40x64xbf16>, vector<64x64xf32> -> vector<64x64xf32>
    %70 = arith.addf %63, %69 : vector<64x64xf32>
    %c2_103 = arith.constant 2 : index
    %c0_104 = arith.constant 0 : index
    %c0_105 = arith.constant 0 : index
    %71 = vector.load %arg7[%c2_103, %c0_104, %c0_105] : memref<10x10x40xf32, #tpu.memory_space<vmem>>, vector<8x8x40xf32>
    %72 = vector.shape_cast %71 : vector<8x8x40xf32> to vector<64x40xf32>
    %73 = arith.truncf %72 : vector<64x40xf32> to vector<64x40xbf16>
    %c6 = arith.constant 6 : index
    %c0_106 = arith.constant 0 : index
    %c0_107 = arith.constant 0 : index
    %74 = vector.load %arg2[%c6, %c0_106, %c0_107] : memref<9x40x64xbf16, #tpu.memory_space<vmem>>, vector<1x40x64xbf16>
    %75 = vector.shape_cast %74 : vector<1x40x64xbf16> to vector<40x64xbf16>
    %cst_108 = arith.constant dense<0.000000e+00> : vector<64x64xf32>
    %76 = tpu.matmul %73, %75, %cst_108 {dimension_numbers = #tpu.dot_dimension_numbers<[1], [0], [0], [1], [0, 0, 1, 1], [], []>} : vector<64x40xbf16>, vector<40x64xbf16>, vector<64x64xf32> -> vector<64x64xf32>
    %77 = arith.addf %70, %76 : vector<64x64xf32>
    %c2_109 = arith.constant 2 : index
    %c1_110 = arith.constant 1 : index
    %c0_111 = arith.constant 0 : index
    %78 = vector.load %arg7[%c2_109, %c1_110, %c0_111] : memref<10x10x40xf32, #tpu.memory_space<vmem>>, vector<8x8x40xf32>
    %79 = vector.shape_cast %78 : vector<8x8x40xf32> to vector<64x40xf32>
    %80 = arith.truncf %79 : vector<64x40xf32> to vector<64x40xbf16>
    %c7 = arith.constant 7 : index
    %c0_112 = arith.constant 0 : index
    %c0_113 = arith.constant 0 : index
    %81 = vector.load %arg2[%c7, %c0_112, %c0_113] : memref<9x40x64xbf16, #tpu.memory_space<vmem>>, vector<1x40x64xbf16>
    %82 = vector.shape_cast %81 : vector<1x40x64xbf16> to vector<40x64xbf16>
    %cst_114 = arith.constant dense<0.000000e+00> : vector<64x64xf32>
    %83 = tpu.matmul %80, %82, %cst_114 {dimension_numbers = #tpu.dot_dimension_numbers<[1], [0], [0], [1], [0, 0, 1, 1], [], []>} : vector<64x40xbf16>, vector<40x64xbf16>, vector<64x64xf32> -> vector<64x64xf32>
    %84 = arith.addf %77, %83 : vector<64x64xf32>
    %c2_115 = arith.constant 2 : index
    %c2_116 = arith.constant 2 : index
    %c0_117 = arith.constant 0 : index
    %85 = vector.load %arg7[%c2_115, %c2_116, %c0_117] : memref<10x10x40xf32, #tpu.memory_space<vmem>>, vector<8x8x40xf32>
    %86 = vector.shape_cast %85 : vector<8x8x40xf32> to vector<64x40xf32>
    %87 = arith.truncf %86 : vector<64x40xf32> to vector<64x40xbf16>
    %c8 = arith.constant 8 : index
    %c0_118 = arith.constant 0 : index
    %c0_119 = arith.constant 0 : index
    %88 = vector.load %arg2[%c8, %c0_118, %c0_119] : memref<9x40x64xbf16, #tpu.memory_space<vmem>>, vector<1x40x64xbf16>
    %89 = vector.shape_cast %88 : vector<1x40x64xbf16> to vector<40x64xbf16>
    %cst_120 = arith.constant dense<0.000000e+00> : vector<64x64xf32>
    %90 = tpu.matmul %87, %89, %cst_120 {dimension_numbers = #tpu.dot_dimension_numbers<[1], [0], [0], [1], [0, 0, 1, 1], [], []>} : vector<64x40xbf16>, vector<40x64xbf16>, vector<64x64xf32> -> vector<64x64xf32>
    %91 = arith.addf %84, %90 : vector<64x64xf32>
    %c0_121 = arith.constant 0 : index
    %c0_122 = arith.constant 0 : index
    %92 = vector.load %arg3[%c0_121, %c0_122] : memref<1x64xf32, #tpu.memory_space<vmem>>, vector<1x64xf32>
    %93 = vector.broadcast %92 : vector<1x64xf32> to vector<64x64xf32>
    %94 = arith.addf %91, %93 : vector<64x64xf32>
    %cst_123 = arith.constant 0.000000e+00 : f32
    %95 = vector.broadcast %cst_123 : f32 to vector<64x64xf32>
    %96 = arith.maximumf %94, %95 : vector<64x64xf32>
    %97 = vector.shape_cast %96 : vector<64x64xf32> to vector<8x8x64xf32>
    %c1_124 = arith.constant 1 : index
    %c1_125 = arith.constant 1 : index
    %c8_126 = arith.constant 8 : index
    %98 = vector.load %arg8[%c1_124, %c1_125, %c8_126] : memref<10x10x80xf32, #tpu.memory_space<vmem>>, vector<8x8x64xf32>
    tpu.vector_store %arg8[%c1_124, %c1_125, %c8_126], %97 {strides = array<i32>} : memref<10x10x80xf32, #tpu.memory_space<vmem>>, vector<8x8x64xf32>,
    %cst_127 = arith.constant 0.000000e+00 : f32
    %99 = vector.broadcast %cst_127 : f32 to vector<64x64xf32>
    %c0_128 = arith.constant 0 : index
    %c0_129 = arith.constant 0 : index
    %c0_130 = arith.constant 0 : index
    %100 = vector.load %arg8[%c0_128, %c0_129, %c0_130] : memref<10x10x80xf32, #tpu.memory_space<vmem>>, vector<8x8x80xf32>
    %101 = vector.shape_cast %100 : vector<8x8x80xf32> to vector<64x80xf32>
    %102 = arith.truncf %101 : vector<64x80xf32> to vector<64x80xbf16>
    %c0_131 = arith.constant 0 : index
    %c0_132 = arith.constant 0 : index
    %c0_133 = arith.constant 0 : index
    %103 = vector.load %arg4[%c0_131, %c0_132, %c0_133] : memref<9x80x64xbf16, #tpu.memory_space<vmem>>, vector<1x80x64xbf16>
    %104 = vector.shape_cast %103 : vector<1x80x64xbf16> to vector<80x64xbf16>
    %cst_134 = arith.constant dense<0.000000e+00> : vector<64x64xf32>
    %105 = tpu.matmul %102, %104, %cst_134 {dimension_numbers = #tpu.dot_dimension_numbers<[1], [0], [0], [1], [0, 0, 1, 1], [], []>} : vector<64x80xbf16>, vector<80x64xbf16>, vector<64x64xf32> -> vector<64x64xf32>
    %106 = arith.addf %99, %105 : vector<64x64xf32>
    %c0_135 = arith.constant 0 : index
    %c1_136 = arith.constant 1 : index
    %c0_137 = arith.constant 0 : index
    %107 = vector.load %arg8[%c0_135, %c1_136, %c0_137] : memref<10x10x80xf32, #tpu.memory_space<vmem>>, vector<8x8x80xf32>
    %108 = vector.shape_cast %107 : vector<8x8x80xf32> to vector<64x80xf32>
    %109 = arith.truncf %108 : vector<64x80xf32> to vector<64x80xbf16>
    %c1_138 = arith.constant 1 : index
    %c0_139 = arith.constant 0 : index
    %c0_140 = arith.constant 0 : index
    %110 = vector.load %arg4[%c1_138, %c0_139, %c0_140] : memref<9x80x64xbf16, #tpu.memory_space<vmem>>, vector<1x80x64xbf16>
    %111 = vector.shape_cast %110 : vector<1x80x64xbf16> to vector<80x64xbf16>
    %cst_141 = arith.constant dense<0.000000e+00> : vector<64x64xf32>
    %112 = tpu.matmul %109, %111, %cst_141 {dimension_numbers = #tpu.dot_dimension_numbers<[1], [0], [0], [1], [0, 0, 1, 1], [], []>} : vector<64x80xbf16>, vector<80x64xbf16>, vector<64x64xf32> -> vector<64x64xf32>
    %113 = arith.addf %106, %112 : vector<64x64xf32>
    %c0_142 = arith.constant 0 : index
    %c2_143 = arith.constant 2 : index
    %c0_144 = arith.constant 0 : index
    %114 = vector.load %arg8[%c0_142, %c2_143, %c0_144] : memref<10x10x80xf32, #tpu.memory_space<vmem>>, vector<8x8x80xf32>
    %115 = vector.shape_cast %114 : vector<8x8x80xf32> to vector<64x80xf32>
    %116 = arith.truncf %115 : vector<64x80xf32> to vector<64x80xbf16>
    %c2_145 = arith.constant 2 : index
    %c0_146 = arith.constant 0 : index
    %c0_147 = arith.constant 0 : index
    %117 = vector.load %arg4[%c2_145, %c0_146, %c0_147] : memref<9x80x64xbf16, #tpu.memory_space<vmem>>, vector<1x80x64xbf16>
    %118 = vector.shape_cast %117 : vector<1x80x64xbf16> to vector<80x64xbf16>
    %cst_148 = arith.constant dense<0.000000e+00> : vector<64x64xf32>
    %119 = tpu.matmul %116, %118, %cst_148 {dimension_numbers = #tpu.dot_dimension_numbers<[1], [0], [0], [1], [0, 0, 1, 1], [], []>} : vector<64x80xbf16>, vector<80x64xbf16>, vector<64x64xf32> -> vector<64x64xf32>
    %120 = arith.addf %113, %119 : vector<64x64xf32>
    %c1_149 = arith.constant 1 : index
    %c0_150 = arith.constant 0 : index
    %c0_151 = arith.constant 0 : index
    %121 = vector.load %arg8[%c1_149, %c0_150, %c0_151] : memref<10x10x80xf32, #tpu.memory_space<vmem>>, vector<8x8x80xf32>
    %122 = vector.shape_cast %121 : vector<8x8x80xf32> to vector<64x80xf32>
    %123 = arith.truncf %122 : vector<64x80xf32> to vector<64x80xbf16>
    %c3_152 = arith.constant 3 : index
    %c0_153 = arith.constant 0 : index
    %c0_154 = arith.constant 0 : index
    %124 = vector.load %arg4[%c3_152, %c0_153, %c0_154] : memref<9x80x64xbf16, #tpu.memory_space<vmem>>, vector<1x80x64xbf16>
    %125 = vector.shape_cast %124 : vector<1x80x64xbf16> to vector<80x64xbf16>
    %cst_155 = arith.constant dense<0.000000e+00> : vector<64x64xf32>
    %126 = tpu.matmul %123, %125, %cst_155 {dimension_numbers = #tpu.dot_dimension_numbers<[1], [0], [0], [1], [0, 0, 1, 1], [], []>} : vector<64x80xbf16>, vector<80x64xbf16>, vector<64x64xf32> -> vector<64x64xf32>
    %127 = arith.addf %120, %126 : vector<64x64xf32>
    %c1_156 = arith.constant 1 : index
    %c1_157 = arith.constant 1 : index
    %c0_158 = arith.constant 0 : index
    %128 = vector.load %arg8[%c1_156, %c1_157, %c0_158] : memref<10x10x80xf32, #tpu.memory_space<vmem>>, vector<8x8x80xf32>
    %129 = vector.shape_cast %128 : vector<8x8x80xf32> to vector<64x80xf32>
    %130 = arith.truncf %129 : vector<64x80xf32> to vector<64x80xbf16>
    %c4_159 = arith.constant 4 : index
    %c0_160 = arith.constant 0 : index
    %c0_161 = arith.constant 0 : index
    %131 = vector.load %arg4[%c4_159, %c0_160, %c0_161] : memref<9x80x64xbf16, #tpu.memory_space<vmem>>, vector<1x80x64xbf16>
    %132 = vector.shape_cast %131 : vector<1x80x64xbf16> to vector<80x64xbf16>
    %cst_162 = arith.constant dense<0.000000e+00> : vector<64x64xf32>
    %133 = tpu.matmul %130, %132, %cst_162 {dimension_numbers = #tpu.dot_dimension_numbers<[1], [0], [0], [1], [0, 0, 1, 1], [], []>} : vector<64x80xbf16>, vector<80x64xbf16>, vector<64x64xf32> -> vector<64x64xf32>
    %134 = arith.addf %127, %133 : vector<64x64xf32>
    %c1_163 = arith.constant 1 : index
    %c2_164 = arith.constant 2 : index
    %c0_165 = arith.constant 0 : index
    %135 = vector.load %arg8[%c1_163, %c2_164, %c0_165] : memref<10x10x80xf32, #tpu.memory_space<vmem>>, vector<8x8x80xf32>
    %136 = vector.shape_cast %135 : vector<8x8x80xf32> to vector<64x80xf32>
    %137 = arith.truncf %136 : vector<64x80xf32> to vector<64x80xbf16>
    %c5_166 = arith.constant 5 : index
    %c0_167 = arith.constant 0 : index
    %c0_168 = arith.constant 0 : index
    %138 = vector.load %arg4[%c5_166, %c0_167, %c0_168] : memref<9x80x64xbf16, #tpu.memory_space<vmem>>, vector<1x80x64xbf16>
    %139 = vector.shape_cast %138 : vector<1x80x64xbf16> to vector<80x64xbf16>
    %cst_169 = arith.constant dense<0.000000e+00> : vector<64x64xf32>
    %140 = tpu.matmul %137, %139, %cst_169 {dimension_numbers = #tpu.dot_dimension_numbers<[1], [0], [0], [1], [0, 0, 1, 1], [], []>} : vector<64x80xbf16>, vector<80x64xbf16>, vector<64x64xf32> -> vector<64x64xf32>
    %141 = arith.addf %134, %140 : vector<64x64xf32>
    %c2_170 = arith.constant 2 : index
    %c0_171 = arith.constant 0 : index
    %c0_172 = arith.constant 0 : index
    %142 = vector.load %arg8[%c2_170, %c0_171, %c0_172] : memref<10x10x80xf32, #tpu.memory_space<vmem>>, vector<8x8x80xf32>
    %143 = vector.shape_cast %142 : vector<8x8x80xf32> to vector<64x80xf32>
    %144 = arith.truncf %143 : vector<64x80xf32> to vector<64x80xbf16>
    %c6_173 = arith.constant 6 : index
    %c0_174 = arith.constant 0 : index
    %c0_175 = arith.constant 0 : index
    %145 = vector.load %arg4[%c6_173, %c0_174, %c0_175] : memref<9x80x64xbf16, #tpu.memory_space<vmem>>, vector<1x80x64xbf16>
    %146 = vector.shape_cast %145 : vector<1x80x64xbf16> to vector<80x64xbf16>
    %cst_176 = arith.constant dense<0.000000e+00> : vector<64x64xf32>
    %147 = tpu.matmul %144, %146, %cst_176 {dimension_numbers = #tpu.dot_dimension_numbers<[1], [0], [0], [1], [0, 0, 1, 1], [], []>} : vector<64x80xbf16>, vector<80x64xbf16>, vector<64x64xf32> -> vector<64x64xf32>
    %148 = arith.addf %141, %147 : vector<64x64xf32>
    %c2_177 = arith.constant 2 : index
    %c1_178 = arith.constant 1 : index
    %c0_179 = arith.constant 0 : index
    %149 = vector.load %arg8[%c2_177, %c1_178, %c0_179] : memref<10x10x80xf32, #tpu.memory_space<vmem>>, vector<8x8x80xf32>
    %150 = vector.shape_cast %149 : vector<8x8x80xf32> to vector<64x80xf32>
    %151 = arith.truncf %150 : vector<64x80xf32> to vector<64x80xbf16>
    %c7_180 = arith.constant 7 : index
    %c0_181 = arith.constant 0 : index
    %c0_182 = arith.constant 0 : index
    %152 = vector.load %arg4[%c7_180, %c0_181, %c0_182] : memref<9x80x64xbf16, #tpu.memory_space<vmem>>, vector<1x80x64xbf16>
    %153 = vector.shape_cast %152 : vector<1x80x64xbf16> to vector<80x64xbf16>
    %cst_183 = arith.constant dense<0.000000e+00> : vector<64x64xf32>
    %154 = tpu.matmul %151, %153, %cst_183 {dimension_numbers = #tpu.dot_dimension_numbers<[1], [0], [0], [1], [0, 0, 1, 1], [], []>} : vector<64x80xbf16>, vector<80x64xbf16>, vector<64x64xf32> -> vector<64x64xf32>
    %155 = arith.addf %148, %154 : vector<64x64xf32>
    %c2_184 = arith.constant 2 : index
    %c2_185 = arith.constant 2 : index
    %c0_186 = arith.constant 0 : index
    %156 = vector.load %arg8[%c2_184, %c2_185, %c0_186] : memref<10x10x80xf32, #tpu.memory_space<vmem>>, vector<8x8x80xf32>
    %157 = vector.shape_cast %156 : vector<8x8x80xf32> to vector<64x80xf32>
    %158 = arith.truncf %157 : vector<64x80xf32> to vector<64x80xbf16>
    %c8_187 = arith.constant 8 : index
    %c0_188 = arith.constant 0 : index
    %c0_189 = arith.constant 0 : index
    %159 = vector.load %arg4[%c8_187, %c0_188, %c0_189] : memref<9x80x64xbf16, #tpu.memory_space<vmem>>, vector<1x80x64xbf16>
    %160 = vector.shape_cast %159 : vector<1x80x64xbf16> to vector<80x64xbf16>
    %cst_190 = arith.constant dense<0.000000e+00> : vector<64x64xf32>
    %161 = tpu.matmul %158, %160, %cst_190 {dimension_numbers = #tpu.dot_dimension_numbers<[1], [0], [0], [1], [0, 0, 1, 1], [], []>} : vector<64x80xbf16>, vector<80x64xbf16>, vector<64x64xf32> -> vector<64x64xf32>
    %162 = arith.addf %155, %161 : vector<64x64xf32>
    %c0_191 = arith.constant 0 : index
    %c0_192 = arith.constant 0 : index
    %163 = vector.load %arg5[%c0_191, %c0_192] : memref<1x64xf32, #tpu.memory_space<vmem>>, vector<1x64xf32>
    %164 = vector.broadcast %163 : vector<1x64xf32> to vector<64x64xf32>
    %165 = arith.addf %162, %164 : vector<64x64xf32>
    %cst_193 = arith.constant 0.000000e+00 : f32
    %166 = vector.broadcast %cst_193 : f32 to vector<64x64xf32>
    %167 = arith.maximumf %165, %166 : vector<64x64xf32>
    %168 = vector.shape_cast %167 : vector<64x64xf32> to vector<1x8x8x64xf32>
    %c0_194 = arith.constant 0 : index
    %c0_195 = arith.constant 0 : index
    %c0_196 = arith.constant 0 : index
    %c0_197 = arith.constant 0 : index
    %169 = vector.load %arg6[%c0_194, %c0_195, %c0_196, %c0_197] : memref<1x8x8x64xf32, #tpu.memory_space<vmem>>, vector<1x8x8x64xf32>
    tpu.vector_store %arg6[%c0_194, %c0_195, %c0_196, %c0_197], %168 {strides = array<i32>} : memref<1x8x8x64xf32, #tpu.memory_space<vmem>>, vector<1x8x8x64xf32>,
    return
  }
  func.func @transform_0(%arg0: i32) -> (i32, i32, i32, i32, i32, i32, i32) {
    %c0_i32 = arith.constant 0 : i32
    %c0_i32_0 = arith.constant 0 : i32
    %c0_i32_1 = arith.constant 0 : i32
    %c0_i32_2 = arith.constant 0 : i32
    %c0_i32_3 = arith.constant 0 : i32
    %c0_i32_4 = arith.constant 0 : i32
    %c0_i32_5 = arith.constant 0 : i32
    return %arg0, %c0_i32, %c0_i32_0, %c0_i32_1, %c0_i32_2, %c0_i32_3, %c0_i32_4 : i32, i32, i32, i32, i32, i32, i32
  }
  func.func @transform_1(%arg0: i32) -> (i32, i32, i32) {
    %c0_i32 = arith.constant 0 : i32
    %c0_i32_0 = arith.constant 0 : i32
    %c0_i32_1 = arith.constant 0 : i32
    %c0_i32_2 = arith.constant 0 : i32
    return %c0_i32, %c0_i32_0, %c0_i32_1 : i32, i32, i32
  }
  func.func @transform_2(%arg0: i32) -> (i32, i32) {
    %c0_i32 = arith.constant 0 : i32
    %c0_i32_0 = arith.constant 0 : i32
    %c0_i32_1 = arith.constant 0 : i32
    return %c0_i32, %c0_i32_0 : i32, i32
  }
  func.func @transform_3(%arg0: i32) -> (i32, i32, i32) {
    %c0_i32 = arith.constant 0 : i32
    %c0_i32_0 = arith.constant 0 : i32
    %c0_i32_1 = arith.constant 0 : i32
    %c0_i32_2 = arith.constant 0 : i32
    return %c0_i32, %c0_i32_0, %c0_i32_1 : i32, i32, i32
  }
  func.func @transform_4(%arg0: i32) -> (i32, i32) {
    %c0_i32 = arith.constant 0 : i32
    %c0_i32_0 = arith.constant 0 : i32
    %c0_i32_1 = arith.constant 0 : i32
    return %c0_i32, %c0_i32_0 : i32, i32
  }
  func.func @transform_5(%arg0: i32) -> (i32, i32, i32, i32) {
    %c0_i32 = arith.constant 0 : i32
    %c0_i32_0 = arith.constant 0 : i32
    %c0_i32_1 = arith.constant 0 : i32
    %c0_i32_2 = arith.constant 0 : i32
    return %arg0, %c0_i32, %c0_i32_0, %c0_i32_1 : i32, i32, i32, i32
  }
}

</mosaic_0001>

<bundles_post_ra>
// kernel: tpu_custom_call.1
= control target key start
LH: loop header
LB: loop body
LE: loop exit
PB: predicated region body
PF: predicated region fallthrough
CT: control target
= control target key end

     0   :  { %10 = vsyncpa [#allocation5], 0  ;;  %s3925_s0 = inlined_call_operand.hbm [shape: f32[2,2,2,2,8,8,32], index: 0, kind: input, shape index: {}]   ;;  %s3926_s1 = inlined_call_operand.vmem [shape: bf16[9,40,64], index: 1, kind: input, shape index: {}]   ;;  %s3927_s2 = inlined_call_operand.vmem [shape: f32[1,64], index: 2, kind: input, shape index: {}]   ;;  %s3928_s3 = inlined_call_operand.vmem [shape: bf16[9,80,64], index: 3, kind: input, shape index: {}]   ;;  %s3929_s4 = inlined_call_operand.vmem [shape: f32[1,64], index: 4, kind: input, shape index: {}]   ;;  %s3930_s5 = inlined_call_operand.hbm [shape: f32[2,8,8,64], index: 5, kind: output, shape index: {}]  }
   0x1   :  { %12 = vsyncpa [#allocation5 + $0x1], 0 }
   0x2   :  { %13 = vsyncpa [#allocation6], 0 }
   0x3   :  { %15 = vsyncpa [#allocation6 + $0x1], 0  ;;  %s3064_s18 = smov 0   ;;  %s3066_s19 = smov 0  }
   0x4   :  { %s3068_s20 = smov 0   ;;  %s3070_s21 = smov 0  }
   0x5 LB: > { %s3085_s22 = sadd.s32 4294967295, %s3026_s21   ;;  %s2291_s23 = sadd.s32 4294967294, %s3026_s21   ;;  %s3026_s21 = sphi %s3070_s21, %s3940_s21   ;;  %s3022_s20 = sphi %s3068_s20, %s3939_s20   ;;  %s3018_s19 = sphi %s3066_s19, %s3938_s19   ;;  %s3014_s18 = sphi %s3064_s18, %s3937_s18  }
   0x6   : > { %s3089_s24 = sadd.s32 1, %s3026_s21   ;;  %s28_s25 = sadd.s32 1, %s3022_s20 }
   0x7   : > { %s25_s26 = ssub.s32 %s3026_s21, %s3089_s24  ;;  %p35_p0 = scmp.ne.s32.totalorder %s3022_s20, %s3018_s19 }
   0x8   : > { %p26_p1 = scmp.eq.s32.totalorder %s25_s26, 0  ;;  %p36_p2 = scmp.eq.s32.totalorder %s3026_s21, 0 }
   0x9   : > { %p41_p3 = scmp.ne.s32.totalorder %s3018_s19, %s3014_s18  ;;  %p42_p4 = scmp.eq.s32.totalorder %s3085_s22, 0 }
   0xa   : > { %s3101_s27 = scalar_select %p26_p1, %s3022_s20, %s28_s25  }
   0xb   : > { %p3103_p5 = por %p36_p2, %p35_p0  ;;  %p3107_p6 = por %p42_p4, %p41_p3 }
   0xc   : > { %p149_p7 = scmp.eq.s32.totalorder %s3085_s22, 1  ;;  %p155_p8 = scmp.eq.s32.totalorder %s2291_s23, 1 }
   0xd   : > { %p2888_p10 = scmp.lt.s32.totalorder %s3026_s21, 2  ;;  %s187_s7 = sand.u32 1, %s3022_s20  }
   0xe   : > { %p3114_p11 = por %p149_p7, %p35_p0  ;;  %p3118_p12 = por %p155_p8, %p41_p3 }
   0xf   : > { %s2805_s8 = sshll.u32 %s3026_s21, 9  ;;  %s2294_s9 = sshll.u32 %s187_s7, 9 }
  0x10   : > { %s196_s12 = scalar_lea.hbm %s3925_s0, %s2805_s8  ;;  %s191_s14 = scalar_lea.vmem [#allocation4], %s2294_s9 }
  0x11   : > { %s197_s13 = sshll.u32 %s196_s12, 4  ;;  %s199_s15 = sshll.u32 %s191_s14, 4  ;;  %s198_s13 = int_to_ptr.hbm [resolvable:$true] %s197_s13  ;;  %s200_s15 = int_to_ptr.vmem [resolvable:$true] %s199_s15 }
  0x12   : > { %p3129_p13 = pnand %p2888_p10, %p3103_p5  ;;  %p2297_p0 = scmp.ge.s32.totalorder %s3026_s21, 1 }
  0x13   : > { %p207_p1 = scmp.lt.s32.totalorder %s3026_s21, 3  ;;  %s188_s17 = scalar_lea.sflag [#allocation5], %s187_s7 }
  0x14   : > { %s2930_s23 = sshra.s32 %s198_s13, 4  ;;  %p2934_p3 = pneg %p3129_p13  ;;  %s2931_s23 = int_to_ptr.hbm [resolvable:$true] %s2930_s23 }
  0x15   : > { %s2932_s25 = scalar_lea.hbm %s2931_s23, 512  ;;  %s2937_s28 = scalar_lea.hbm %s3925_s0, 1024 }
  0x16   : > { %p2933_p2 = scmp.ne.s32.totalorder %s2931_s23, %s2932_s25  ;;  %p2938_p5 = scmp.lt.s32.totalorder %s2931_s23, %s3925_s0 }
  0x17   : > { %p2939_p8 = scmp.lt.s32.totalorder %s2937_s28, %s2932_s25 }
  0x18   : > { %p2935_p4 = pnand %p2934_p3, %p2933_p2 }
  0x19   : > { %p2940_p10 = por %p2939_p8, %p2938_p5 }
  0x1a   : > { %p2936_p7 = pneg %p2935_p4 }
  0x1c   : > { %p2941_p9 = pnand %p2940_p10, %p2936_p7 }
  0x1e   : > { %2944 = shalt.err (!%p2941_p9)
}
  0x1f   : > { %s3028_s7 = smov 128   ;;  %s3029_s11 = smov 8  }
  0x20   : > { %2883 = dma.hbm_to_vmem [thread:$0]  (!%p3129_p13), %s198_s13, 8192, %s200_s15, %s188_s17, %s3028_s7, %s3028_s7, %s3029_s11  }
  0x21   : > { %p208_p2 = pnand %p2297_p0, %p207_p1 }
  0x22   : > { %s3150_s12 = sand.u32 (!%p208_p2), 1, %s3018_s19  }
  0x23   : > { %211 = sbr.rel (%p208_p2) target bundleno = 873 (0x369), region = 40  ;;  %s2298_s14 = sshll.u32 (!%p208_p2), %s3150_s12, 9 }
  0x24   : > { %s214_s23 = scalar_lea.sflag (!%p208_p2), [#allocation5], %s3150_s12  ;;  %s3154_s25 = scalar_lea.vmem (!%p208_p2), [#allocation4], %s2298_s14 }
  0x28   : > { %3005 = dma.done.wait (%p3107_p6), %s214_s23, 8192  }
  0x29   : > { %3007 = vsyncadd (%p3107_p6), %s214_s23, 4294959104  ;;  %v249_v0 = vld [vmem:[%s3154_s25 + $0x18] sm:$0xff]  ;;  %v246_v5 = vld [vmem:[%s3154_s25] sm:$0xff]  ;;  %vm373_vm0 = vcmask 326656   ;;  %vm375_vm1 = vcmask 320512   ;;  %v3030_v28 = vmov 0.0  }
  0x2a   : > { %v2303_v1 = vld [vmem:[%s3154_s25 + $0x58] sm:$0xff]  ;;  %v2300_v7 = vld [vmem:[%s3154_s25 + $0x40] sm:$0xff]  ;;  %v251_v25 = vld [vmem:[%s3154_s25 + $0x28] sm:$0xff]  ;;  %383 = vst.msk [vmem:[#allocation2 + $0x40] sm:$0xff] %vm373_vm0, %v3030_v28  ;;  %s3031_s29 = smov 4   ;;  %vm521_vm2 = vcmask 1043456  }
  0x2b   : > { %v2311_v2 = vld [vmem:[%s3154_s25 + $0x98] sm:$0xff]  ;;  %v266_v3 = vmax.f32 %v249_v0, %v2303_v1  ;;  %v2308_v8 = vld [vmem:[%s3154_s25 + $0x80] sm:$0xff]  ;;  %v263_v10 = vmax.f32 %v246_v5, %v2300_v7  ;;  %v2305_v26 = vld [vmem:[%s3154_s25 + $0x68] sm:$0xff]  ;;  %384 = vst.msk [vmem:[#allocation2 + $0x48] sm:$0x3] %vm375_vm1, %v3030_v28  ;;  %vm450_vm3 = vcmask 293920  }
  0x2c   : > { %v2319_v4 = vld [vmem:[%s3154_s25 + $0xd8] sm:$0xff]  ;;  %v2316_v12 = vld [vmem:[%s3154_s25 + $0xc0] sm:$0xff]  ;;  %v2313_v27 = vld [vmem:[%s3154_s25 + $0xa8] sm:$0xff]  ;;  %v268_v33 = vmax.f32 %v251_v25, %v2305_v26  ;;  %374 = vst.msk [vmem:[#allocation2] sm:$0xff] %vm373_vm0, %v3030_v28  ;;  %s3032_s14 = smov 8   ;;  %vm395_vm4 = vcmask 654336  }
  0x2d   : > { %v283_v6 = vmax.f32 %v266_v3, %v2311_v2  ;;  %v2327_v9 = vld [vmem:[%s3154_s25 + $0x118] sm:$0xff]  ;;  %v250_v13 = vld [vmem:[%s3154_s25 + $0x20] sm:$0xff]  ;;  %v280_v16 = vmax.f32 %v263_v10, %v2308_v8  ;;  %v2321_v37 = vld [vmem:[%s3154_s25 + $0xe8] sm:$0xff]  ;;  %376 = vst.msk [vmem:[#allocation2 + $0x8] sm:$0x3] %vm375_vm1, %v3030_v28  ;;  %vm397_vm5 = vcmask 648192  }
  0x2e   : > { %v2304_v14 = vld [vmem:[%s3154_s25 + $0x60] sm:$0xff]  ;;  %v2335_v15 = vld [vmem:[%s3154_s25 + $0x158] sm:$0xff]  ;;  %v248_v38 = vld [vmem:[%s3154_s25 + $0x10] sm:$0xff]  ;;  %v285_v41 = vmax.f32 %v268_v33, %v2313_v27  ;;  %377 = vst.msk [vmem:[#allocation2 + $0x10] sm:$0xff] %vm373_vm0, %v3030_v28  ;;  %vm1262_vm6 = vcmask 588864   ;;  %s2299_s8 = sshll.u32 %s3150_s12, 6 }
  0x2f   : > { %v300_v11 = vmax.f32 %v283_v6, %v2319_v4  ;;  %v267_v17 = vmax.f32 %v250_v13, %v2304_v14  ;;  %v2312_v18 = vld [vmem:[%s3154_s25 + $0xa0] sm:$0xff]  ;;  %v2343_v20 = vld [vmem:[%s3154_s25 + $0x198] sm:$0xff]  ;;  %v297_v23 = vmax.f32 %v280_v16, %v2316_v12  ;;  %v2302_v42 = vld [vmem:[%s3154_s25 + $0x50] sm:$0xff]  ;;  %378 = vst.msk [vmem:[#allocation2 + $0x18] sm:$0x3] %vm375_vm1, %v3030_v28  ;;  %vm2193_vm7 = vcmask 523264  }
  0x30   : > { %v2324_v21 = vld [vmem:[%s3154_s25 + $0x100] sm:$0xff]  ;;  %v2351_v30 = vld [vmem:[%s3154_s25 + $0x1d8] sm:$0xff]  ;;  %v2310_v43 = vld [vmem:[%s3154_s25 + $0x90] sm:$0xff]  ;;  %v265_v49 = vmax.f32 %v248_v38, %v2302_v42  ;;  %v302_v51 = vmax.f32 %v285_v41, %v2321_v37  ;;  %379 = vst.msk [vmem:[#allocation2 + $0x20] sm:$0xff] %vm373_vm0, %v3030_v28  ;;  %s3844_s28 = scalar_lea.vmem [#allocation7], %s2299_s8  ;;  %s2869_s9 = sshll.u32 %s3085_s22, 6 }
  0x31   : > { %v317_v19 = vmax.f32 %v300_v11, %v2327_v9  ;;  %v2320_v22 = vld [vmem:[%s3154_s25 + $0xe0] sm:$0xff]  ;;  %v284_v24 = vmax.f32 %v267_v17, %v2312_v18  ;;  %v314_v34 = vmax.f32 %v297_v23, %v2324_v21  ;;  %v2329_v48 = vld [vmem:[%s3154_s25 + $0x128] sm:$0xff]  ;;  %v2318_v52 = vld [vmem:[%s3154_s25 + $0xd0] sm:$0xff]  ;;  %380 = vst.msk [vmem:[#allocation2 + $0x28] sm:$0x3] %vm375_vm1, %v3030_v28  ;;  %s2214_s11 = scalar_lea.hbm %s3930_s5, %s2869_s9  ;;  %s2215_s23 = sshll.u32 %s3844_s28, 4  ;;  %s2216_s23 = int_to_ptr.vmem [resolvable:$true] %s2215_s23 }
  0x32   : > { %v2332_v31 = vld [vmem:[%s3154_s25 + $0x140] sm:$0xff]  ;;  %v253_v53 = vld [vmem:[%s3154_s25 + $0x38] sm:$0xff]  ;;  %v2337_v58 = vld [vmem:[%s3154_s25 + $0x168] sm:$0xff]  ;;  %v282_v59 = vmax.f32 %v265_v49, %v2310_v43  ;;  %v319_v62 = vmax.f32 %v302_v51, %v2329_v48  ;;  %381 = vst.msk [vmem:[#allocation2 + $0x30] sm:$0xff] %vm373_vm0, %v3030_v28  ;;  %s2203_s22 = scalar_lea.sflag [#allocation6], %s3150_s12  ;;  %s2980_s17 = scalar_lea.hbm %s3930_s5, 128 }
  0x33   : > { %v334_v29 = vmax.f32 %v317_v19, %v2335_v15  ;;  %v2328_v32 = vld [vmem:[%s3154_s25 + $0x120] sm:$0xff]  ;;  %v301_v36 = vmax.f32 %v284_v24, %v2320_v22  ;;  %v331_v44 = vmax.f32 %v314_v34, %v2332_v31  ;;  %v2307_v54 = vld [vmem:[%s3154_s25 + $0x78] sm:$0xff]  ;;  %v2345_v63 = vld [vmem:[%s3154_s25 + $0x1a8] sm:$0xff]  ;;  %382 = vst.msk [vmem:[#allocation2 + $0x38] sm:$0x3] %vm375_vm1, %v3030_v28 }
  0x34   : > { %v2340_v35 = vld [vmem:[%s3154_s25 + $0x180] sm:$0xff]  ;;  %v270_v60 = vmax.f32 %v253_v53, %v2307_v54  ;;  %v2315_v61 = vld [vmem:[%s3154_s25 + $0xb8] sm:$0xff]  ;;  %v2326_v0 = vld [vmem:[%s3154_s25 + $0x110] sm:$0xff]  ;;  %v299_v4 = vmax.f32 %v282_v59, %v2318_v52  ;;  %v336_v9 = vmax.f32 %v319_v62, %v2337_v58  ;;  %385 = vst.msk [vmem:[#allocation2 + $0x50] sm:$0xff] %vm373_vm0, %v3030_v28 }
  0x35   : > { %v351_v39 = vmax.f32 %v334_v29, %v2343_v20  ;;  %v2336_v40 = vld [vmem:[%s3154_s25 + $0x160] sm:$0xff]  ;;  %v318_v46 = vmax.f32 %v301_v36, %v2328_v32  ;;  %v348_v55 = vmax.f32 %v331_v44, %v2340_v35  ;;  %v2323_v1 = vld [vmem:[%s3154_s25 + $0xf8] sm:$0xff]  ;;  %v252_v6 = vld [vmem:[%s3154_s25 + $0x30] sm:$0xff]  ;;  %386 = vst.msk [vmem:[#allocation2 + $0x58] sm:$0x3] %vm375_vm1, %v3030_v28 }
  0x36   : > { %v2348_v45 = vld [vmem:[%s3154_s25 + $0x1c0] sm:$0xff]  ;;  %v287_v5 = vmax.f32 %v270_v60, %v2315_v61  ;;  %v2306_v7 = vld [vmem:[%s3154_s25 + $0x70] sm:$0xff]  ;;  %v2331_v11 = vld [vmem:[%s3154_s25 + $0x138] sm:$0xff]  ;;  %v316_v14 = vmax.f32 %v299_v4, %v2326_v0  ;;  %v353_v19 = vmax.f32 %v336_v9, %v2345_v63  ;;  %387 = vst.msk [vmem:[#allocation2 + $0x60] sm:$0xff] %vm373_vm0, %v3030_v28 }
  0x37   : > { %v2344_v47 = vld [vmem:[%s3154_s25 + $0x1a0] sm:$0xff]  ;;  %v368_v50 = vmax.f32 %v351_v39, %v2351_v30  ;;  %v335_v56 = vmax.f32 %v318_v46, %v2336_v40  ;;  %v365_v2 = vmax.f32 %v348_v55, %v2348_v45  ;;  %v2314_v8 = vld [vmem:[%s3154_s25 + $0xb0] sm:$0xff]  ;;  %v269_v12 = vmax.f32 %v252_v6, %v2306_v7  ;;  %v2353_v13 = vld [vmem:[%s3154_s25 + $0x1e8] sm:$0xff]  ;;  %389 = vst.msk [vmem:[#allocation2 + $0x70] sm:$0xff] %vm373_vm0, %v3030_v28 }
  0x38   : > { %v2352_v57 = vld [vmem:[%s3154_s25 + $0x1e0] sm:$0xff]  ;;  %v2334_v10 = vld [vmem:[%s3154_s25 + $0x150] sm:$0xff]  ;;  %v304_v15 = vmax.f32 %v287_v5, %v2323_v1  ;;  %v247_v17 = vld [vmem:[%s3154_s25 + $0x8] sm:$0xff]  ;;  %v370_v35 = vmax.f32 %v353_v19, %v2353_v13  ;;  %388 = vst.msk [vmem:[#allocation2 + $0x68] sm:$0x3] %vm375_vm1, %v3030_v28 }
  0x39   : > { %431 = vrot.lane.b32.xlu0 %v368_v50, %s3031_s29  ;;  %v352_v3 = vmax.f32 %v335_v56, %v2344_v47  ;;  %425 = vrot.lane.b32.xlu1 %v365_v2, %s3031_s29  ;;  %v2322_v16 = vld [vmem:[%s3154_s25 + $0xf0] sm:$0xff]  ;;  %v2339_v20 = vld [vmem:[%s3154_s25 + $0x178] sm:$0xff]  ;;  %v286_v21 = vmax.f32 %v269_v12, %v2314_v8  ;;  %v333_v24 = vmax.f32 %v316_v14, %v2334_v10 }
  0x3a   : > { %v2301_v22 = vld [vmem:[%s3154_s25 + $0x48] sm:$0xff]  ;;  %v2342_v25 = vld [vmem:[%s3154_s25 + $0x190] sm:$0xff]  ;;  %v321_v26 = vmax.f32 %v304_v15, %v2331_v11  ;;  %v2360_v33 = vld [vmem:[%s3926_s1 + $0x24] sm:$0xf]  ;;  %390 = vst.msk [vmem:[#allocation2 + $0x78] sm:$0x3] %vm375_vm1, %v3030_v28 }
  0x3b   : > { %v369_v18 = vmax.f32 %v352_v3, %v2352_v57  ;;  %v2309_v23 = vld [vmem:[%s3154_s25 + $0x88] sm:$0xff]  ;;  %v2330_v27 = vld [vmem:[%s3154_s25 + $0x130] sm:$0xff]  ;;  %v264_v30 = vmax.f32 %v247_v17, %v2301_v22  ;;  %v303_v31 = vmax.f32 %v286_v21, %v2322_v16  ;;  %v503_v38 = vunpack.c.l.b16 %v2360_v33  ;;  %v2347_v40 = vld [vmem:[%s3154_s25 + $0x1b8] sm:$0xff]  ;;  %391 = vst.msk [vmem:[#allocation2 + $0x80] sm:$0xff] %vm373_vm0, %v3030_v28 }
  0x3c   : > { %v2338_v29 = vld [vmem:[%s3154_s25 + $0x170] sm:$0xff]  ;;  %v2317_v32 = vld [vmem:[%s3154_s25 + $0xc8] sm:$0xff]  ;;  %v338_v36 = vmax.f32 %v321_v26, %v2339_v20  ;;  %v350_v39 = vmax.f32 %v333_v24, %v2342_v25  ;;  %392 = vst.msk [vmem:[#allocation2 + $0x88] sm:$0x3] %vm375_vm1, %v3030_v28  ;;  %v2355_v56 = vld [vmem:[%s3154_s25 + $0x1f8] sm:$0xff] }
  0x3d   : > { %v475_v34 = vld [vmem:[%s3926_s1 + $0x10] sm:$0xf]  ;;  %v281_v37 = vmax.f32 %v264_v30, %v2309_v23  ;;  %v320_v41 = vmax.f32 %v303_v31, %v2330_v27  ;;  %v2325_v42 = vld [vmem:[%s3154_s25 + $0x108] sm:$0xff]  ;;  %v506_v47 = vpack.c.b16 %v503_v38, %v503_v38  ;;  %393 = vst.msk [vmem:[#allocation2 + $0x90] sm:$0xff] %vm373_vm0, %v3030_v28  ;;  %v2809_v2 = vld [vmem:[%s3926_s1 + $0x1c] sm:$0xff] }
  0x3e   : > { %v563_v43 = vunpack.c.l.b16 %v475_v34  ;;  %v2350_v44 = vld [vmem:[%s3154_s25 + $0x1d0] sm:$0xff]  ;;  %v2333_v49 = vld [vmem:[%s3154_s25 + $0x148] sm:$0xff]  ;;  %v355_v51 = vmax.f32 %v338_v36, %v2347_v40  ;;  %394 = vst.msk [vmem:[#allocation2 + $0x98] sm:$0x3] %vm375_vm1, %v3030_v28  ;;  %v2806_v5 = vld [vmem:[%s3926_s1] sm:$0xff] }
  0x3f   : > { %v2346_v45 = vld [vmem:[%s3154_s25 + $0x1b0] sm:$0xff]  ;;  %v298_v46 = vmax.f32 %v281_v37, %v2317_v32  ;;  %v337_v48 = vmax.f32 %v320_v41, %v2338_v29  ;;  %v523_v54 = vsel %vm521_vm2, %v506_v47, 0  ;;  %v367_v55 = vmax.f32 %v350_v39, %v2350_v44  ;;  %v2341_v60 = vld [vmem:[%s3154_s25 + $0x188] sm:$0xff]  ;;  %v2389_v6 = vld [vmem:[%s3926_s1 + $0x38] sm:$0xf]  ;;  %399 = vst.msk [vmem:[#allocation3 + $0x10] sm:$0xff] %vm395_vm4, %v3030_v28 }
  0x40   : > { %v566_v50 = vpack.c.b16 %v563_v43, %v563_v43  ;;  %v2354_v52 = vld [vmem:[%s3154_s25 + $0x1f0] sm:$0xff]  ;;  %530 = vmatpush.bf16.msra.mxu0 %v523_v54  ;;  %2870 = vmatpush.bf16.msra.mxu2 %v523_v54  ;;  %v372_v62 = vmax.f32 %v355_v51, %v2355_v56  ;;  %v2349_v0 = vld [vmem:[%s3154_s25 + $0x1c8] sm:$0xff]  ;;  %v640_v8 = vunpack.c.l.b16 %v2389_v6  ;;  %v2423_v15 = vld [vmem:[%s3926_s1 + $0x60] sm:$0xf]  ;;  %400 = vst.msk [vmem:[#allocation3 + $0x18] sm:$0x3] %vm397_vm5, %v3030_v28 }
  0x41   : > { %433 = vrot.lane.b32.xlu0 %v369_v18, %s3031_s29  ;;  %435 = vrot.lane.b32.xlu1 %v370_v35, %s3031_s29  ;;  %v315_v53 = vmax.f32 %v298_v46, %v2325_v42  ;;  %v354_v57 = vmax.f32 %v337_v48, %v2346_v45  ;;  %v2807_v3 = vld [vmem:[%s3926_s1 + $0x8] sm:$0xff]  ;;  %v2808_v4 = vld [vmem:[%s3926_s1 + $0x14] sm:$0xff]  ;;  %v810_v17 = vunpack.c.l.b16 %v2423_v15  ;;  %v459_v37 = vld [vmem:[#allocation2] sm:$0xff]  ;;  %396 = vst.msk [vmem:[#allocation3] sm:$0xff] %vm395_vm4, %v3030_v28  ;;  %s2217_s25 = sshll.u32 %s2214_s11, 4  ;;  %s2218_s25 = int_to_ptr.hbm [resolvable:$true] %s2217_s25 }
  0x42   : > { %v582_v58 = vsel %vm521_vm2, %v566_v50, 0  ;;  %v2406_v7 = vld [vmem:[%s3926_s1 + $0x4c] sm:$0xf]  ;;  %v643_v10 = vpack.c.b16 %v640_v8, %v640_v8  ;;  %v2440_v16 = vld [vmem:[%s3926_s1 + $0x74] sm:$0xf]  ;;  %v2813_v19 = vld [vmem:[%s3926_s1 + $0x44] sm:$0xff] }
  0x43   : > { %v332_v59 = vmax.f32 %v315_v53, %v2333_v49  ;;  %589 = vmatpush.bf16.msra.mxu1 %v582_v58  ;;  %2873 = vmatpush.bf16.msra.mxu3 %v582_v58  ;;  %v371_v61 = vmax.f32 %v354_v57, %v2354_v52  ;;  %v725_v9 = vunpack.c.l.b16 %v2406_v7  ;;  %v2811_v18 = vld [vmem:[%s3926_s1 + $0x30] sm:$0xff]  ;;  %v895_v20 = vunpack.c.l.b16 %v2440_v16  ;;  %v2815_v29 = vld [vmem:[%s3926_s1 + $0x58] sm:$0xff]  ;;  %v2810_v31 = vld [vmem:[%s3926_s1 + $0x28] sm:$0xff]  ;;  %398 = vst.msk [vmem:[#allocation3 + $0x8] sm:$0x3] %vm397_vm5, %v3030_v28 }
  0x44   : > { %531 = vmatpush.bf16.msra.mxu0 %v2809_v2  ;;  %2871 = vmatpush.bf16.msra.mxu2 %v2809_v2  ;;  %v659_v13 = vsel %vm521_vm2, %v643_v10, 0  ;;  %v813_v23 = vpack.c.b16 %v810_v17, %v810_v17  ;;  %v2817_v30 = vld [vmem:[%s3926_s1 + $0x6c] sm:$0xff]  ;;  %v2812_v32 = vld [vmem:[%s3926_s1 + $0x3c] sm:$0xff]  ;;  %v2816_v34 = vld [vmem:[%s3926_s1 + $0x64] sm:$0xff]  ;;  %401 = vst.msk [vmem:[#allocation3 + $0x20] sm:$0xff] %vm395_vm4, %v3030_v28 }
  0x45   : > { %437 = vrot.lane.b32.xlu2 %v371_v61, %s3031_s29  ;;  %v349_v63 = vmax.f32 %v332_v59, %v2341_v60  ;;  %v728_v11 = vpack.c.b16 %v725_v9, %v725_v9  ;;  %v898_v24 = vpack.c.b16 %v895_v20, %v895_v20  ;;  %v2814_v33 = vld [vmem:[%s3926_s1 + $0x50] sm:$0xff]  ;;  %v476_v36 = vld [vmem:[#allocation2 + $0x1] sm:$0xff]  ;;  %v2474_v53 = vld [vmem:[%s3926_s1 + $0x9c] sm:$0xf]  ;;  %402 = vst.msk [vmem:[#allocation3 + $0x28] sm:$0x3] %vm397_vm5, %v3030_v28 }
  0x46   : > { %v829_v25 = vsel %vm521_vm2, %v813_v23, 0  ;;  %v2457_v51 = vld [vmem:[%s3926_s1 + $0x88] sm:$0xf]  ;;  %v1066_v54 = vunpack.c.l.b16 %v2474_v53  ;;  %v2821_v17 = vld [vmem:[%s3926_s1 + $0x94] sm:$0xff]  ;;  %403 = vst.msk [vmem:[#allocation3 + $0x30] sm:$0xff] %vm395_vm4, %v3030_v28 }
  0x47   : > { %v366_v1 = vmax.f32 %v349_v63, %v2349_v0  ;;  %590 = vmatpush.bf16.msra.mxu1 %v2807_v3  ;;  %2874 = vmatpush.bf16.msra.mxu3 %v2807_v3  ;;  %v744_v14 = vsel %vm521_vm2, %v728_v11, 0  ;;  %v914_v26 = vsel %vm521_vm2, %v898_v24, 0  ;;  %v981_v52 = vunpack.c.l.b16 %v2457_v51  ;;  %v2819_v11 = vld [vmem:[%s3926_s1 + $0x80] sm:$0xff]  ;;  %v2823_v20 = vld [vmem:[%s3926_s1 + $0xa8] sm:$0xff]  ;;  %404 = vst.msk [vmem:[#allocation3 + $0x38] sm:$0x3] %vm397_vm5, %v3030_v28 }
  0x48   : > { %532 = vmatpush.bf16.msra.mxu0 %v2808_v4  ;;  %2872 = vmatpush.bf16.msra.mxu2 %v2808_v4  ;;  %v1069_v58 = vpack.c.b16 %v1066_v54, %v1066_v54  ;;  %v613_v16 = vld [vmem:[#allocation2 + $0x2] sm:$0xff]  ;;  %405 = vst.msk [vmem:[#allocation3 + $0x40] sm:$0xff] %vm395_vm4, %v3030_v28 }
  0x49   : > { %429 = vrot.lane.b32.xlu0 %v367_v55, %s3031_s29  ;;  %439 = vrot.lane.b32.xlu1 %v372_v62, %s3031_s29  ;;  %v984_v55 = vpack.c.b16 %v981_v52, %v981_v52  ;;  %v1131_v52 = vld [vmem:[#allocation2 + $0x92] sm:$0xff]  ;;  %406 = vst.msk [vmem:[#allocation3 + $0x48] sm:$0x3] %vm397_vm5, %v3030_v28 }
  0x4a   : > { %v1085_v62 = vsel %vm521_vm2, %v1069_v58, 0  ;;  %407 = vst.msk [vmem:[#allocation3 + $0x50] sm:$0xff] %vm395_vm4, %v3030_v28 }
  0x4b   : > { %591 = vmatpush.bf16.msra.mxu1 %v2806_v5  ;;  %2875 = vmatpush.bf16.msra.mxu3 %v2806_v5  ;;  %v1000_v61 = vsel %vm521_vm2, %v984_v55, 0  ;;  %v2491_v5 = vld [vmem:[%s3926_s1 + $0xb0] sm:$0xf]  ;;  %408 = vst.msk [vmem:[#allocation3 + $0x58] sm:$0x3] %vm397_vm5, %v3030_v28 }
  0x4c   : > { %666 = vmatpush.bf16.msrb.mxu2 %v659_v13  ;;  %836 = vmatpush.bf16.msrb.mxu0 %v829_v25  ;;  %v1151_v8 = vunpack.c.l.b16 %v2491_v5  ;;  %v2818_v25 = vld [vmem:[%s3926_s1 + $0x78] sm:$0xff]  ;;  %v961_v55 = vld [vmem:[#allocation2 + $0x90] sm:$0xff]  ;;  %409 = vst.msk [vmem:[#allocation3 + $0x60] sm:$0xff] %vm395_vm4, %v3030_v28 }
  0x4d   : > { %427 = vrot.lane.b32.xlu2 %v366_v1, %s3031_s29  ;;  %410 = vst.msk [vmem:[#allocation3 + $0x68] sm:$0x3] %vm397_vm5, %v3030_v28  ;;  %s2974_s29 = sshra.s32 %s2218_s25, 4  ;;  %s2975_s29 = int_to_ptr.hbm [resolvable:$true] %s2974_s29 }
  0x4e   : > { %v1154_v9 = vpack.c.b16 %v1151_v8, %v1151_v8  ;;  %411 = vst.msk [vmem:[#allocation3 + $0x70] sm:$0xff] %vm395_vm4, %v3030_v28  ;;  %s2976_s13 = scalar_lea.hbm %s2975_s29, 64  ;;  %p2981_p0 = scmp.lt.s32.totalorder %s2975_s29, %s3930_s5 }
  0x4f   : > { %751 = vmatpush.bf16.msrb.mxu3 %v744_v14  ;;  %921 = vmatpush.bf16.msrb.mxu1 %v914_v26  ;;  %v2820_v26 = vld [vmem:[%s3926_s1 + $0x8c] sm:$0xff]  ;;  %412 = vst.msk [vmem:[#allocation3 + $0x78] sm:$0x3] %vm397_vm5, %v3030_v28  ;;  %p2977_p6 = scmp.ne.s32.totalorder %s2975_s29, %s2976_s13  ;;  %p2982_p1 = scmp.lt.s32.totalorder %s2980_s17, %s2976_s13 }
  0x50   : > { %667 = vmatpush.bf16.msrb.mxu2 %v2811_v18  ;;  %837 = vmatpush.bf16.msrb.mxu0 %v2815_v29  ;;  %v1170_v10 = vsel %vm521_vm2, %v1154_v9, 0  ;;  %413 = vst.msk [vmem:[#allocation3 + $0x80] sm:$0xff] %vm395_vm4, %v3030_v28 }
  0x51   : > { %414 = vst.msk [vmem:[#allocation3 + $0x88] sm:$0x3] %vm397_vm5, %v3030_v28  ;;  %p2978_p9 = pnand %p2977_p6, %p3114_p11  ;;  %p2983_p3 = por %p2982_p1, %p2981_p0 }
  0x52   : > { %415 = vst.msk [vmem:[#allocation3 + $0x90] sm:$0xff] %vm395_vm4, %v3030_v28 }
  0x53   : > { %752 = vmatpush.bf16.msrb.mxu3 %v2813_v19  ;;  %922 = vmatpush.bf16.msrb.mxu1 %v2817_v30  ;;  %v2822_v30 = vld [vmem:[%s3926_s1 + $0xa0] sm:$0xff]  ;;  %416 = vst.msk [vmem:[#allocation3 + $0x98] sm:$0x3] %vm397_vm5, %v3030_v28  ;;  %v2825_v28 = vld [vmem:[%s3928_s3 + $0x8] sm:$0xff]  ;;  %p2979_p13 = pneg %p2978_p9 }
  0x54   : > { %668 = vmatpush.bf16.msrb.mxu2 %v2810_v31  ;;  %838 = vmatpush.bf16.msrb.mxu0 %v2814_v33 }
  0x55   : > { %p2984_p4 = pnand %p2983_p3, %p2979_p13 }
  0x57   : > { %753 = vmatpush.bf16.msrb.mxu3 %v2812_v32  ;;  %923 = vmatpush.bf16.msrb.mxu1 %v2816_v34 }
  0x9f   : > { %v438_v12 = vpop.permute.xlu2 %437 }
  0xa0   : > { %457 = vst.msk [vmem:[#allocation2 + $0x71] sm:$0xff] %vm450_vm3, %v438_v12 }
  0xa7   : > { %v428_v22 = vpop.permute.xlu2 %427  ;;  %v3377_v1 = vld [vmem:[#allocation2 + $0x71] sm:$0xff] }
  0xa8   : > { %452 = vst.msk [vmem:[#allocation2 + $0x21] sm:$0xff] %vm450_vm3, %v428_v22  ;;  %v3379_v2 = vld [vmem:[#allocation2 + $0x70] sm:$0xff] }
  0xab   : > { %v432_v21 = vpop.permute.xlu0 %431  ;;  %v426_v27 = vpop.permute.xlu1 %425 }
  0xac   : > { %454 = vst.msk [vmem:[#allocation2 + $0x41] sm:$0xff] %vm450_vm3, %v432_v21 }
  0xad   : > { %451 = vst.msk [vmem:[#allocation2 + $0x11] sm:$0xff] %vm450_vm3, %v426_v27 }
  0xaf   : > { %v478_v56 = vld [vmem:[#allocation2 + $0x21] sm:$0xff] }
  0xb0   : > { %v461_v57 = vld [vmem:[#allocation2 + $0x20] sm:$0xff] }
  0xb1   : > { %v869_v13 = vld [vmem:[#allocation2 + $0x22] sm:$0xff] }
  0xb3   : > { %v434_v35 = vpop.permute.xlu0 %433  ;;  %v436_v38 = vpop.permute.xlu1 %435  ;;  %v3343_v43 = vld [vmem:[#allocation2 + $0x41] sm:$0xff] }
  0xb4   : > { %455 = vst.msk [vmem:[#allocation2 + $0x51] sm:$0xff] %vm450_vm3, %v434_v35  ;;  %v477_v39 = vld [vmem:[#allocation2 + $0x11] sm:$0xff]  ;;  %v3347_v46 = vld [vmem:[#allocation2 + $0x40] sm:$0xff] }
  0xb5   : > { %v3337_v40 = vld [vmem:[#allocation2 + $0x10] sm:$0xff]  ;;  %456 = vst.msk [vmem:[#allocation2 + $0x61] sm:$0xff] %vm450_vm3, %v436_v38  ;;  %v484_v41 = vpack.c.bf16 %v477_v39, %v476_v36  ;;  %v791_v14 = vpack.c.bf16 %v478_v56, %v477_v39  ;;  %v871_v22 = vld [vmem:[#allocation2 + $0x42] sm:$0xff] }
  0xb6   : > { %v467_v42 = vpack.c.bf16 %v3337_v40, %v459_v37  ;;  %v868_v12 = vld [vmem:[#allocation2 + $0x12] sm:$0xff]  ;;  %v706_v19 = vpack.c.bf16 %v461_v57, %v3337_v40 }
  0xb7   : > { %2369 = vmatmul.msk.bf16.vlgmr.msra.gmra.mxu0 %vm373_vm0, %v484_v41  ;;  %v876_v15 = vpack.c.bf16 %v869_v13, %v868_v12  ;;  %v621_v18 = vpack.c.bf16 %v868_v12, %v613_v16  ;;  %v874_v38 = vld [vmem:[#allocation2 + $0x72] sm:$0xff] }
  0xb8   : > { %2381 = vmatmul.msk.bf16.vlgmr.msra.gmra.mxu1 %vm373_vm0, %v467_v42  ;;  %1177 = vmatpush.bf16.msra.mxu0 %v1170_v10 }
  0xbb   : > { %v430_v44 = vpop.permute.xlu0 %429  ;;  %v3345_v45 = vld [vmem:[#allocation2 + $0x51] sm:$0xff]  ;;  %v440_v50 = vpop.permute.xlu1 %439 }
  0xbc   : > { %v3349_v47 = vld [vmem:[#allocation2 + $0x50] sm:$0xff]  ;;  %453 = vst.msk [vmem:[#allocation2 + $0x31] sm:$0xff] %vm450_vm3, %v430_v44  ;;  %v3354_v48 = vpack.c.bf16 %v3345_v45, %v3343_v43  ;;  %v482_v3 = vld [vmem:[#allocation2 + $0x61] sm:$0xff]  ;;  %1178 = vmatpush.bf16.msra.mxu0 %v2823_v20 }
  0xbd   : > { %v3358_v49 = vpack.c.bf16 %v3349_v47, %v3347_v46  ;;  %458 = vst.msk [vmem:[#allocation2 + $0x81] sm:$0xff] %vm450_vm3, %v440_v50  ;;  %v465_v4 = vld [vmem:[#allocation2 + $0x60] sm:$0xff]  ;;  %v3389_v6 = vpack.c.bf16 %v3377_v1, %v482_v3  ;;  %v872_v31 = vld [vmem:[#allocation2 + $0x52] sm:$0xff]  ;;  %v793_v33 = vpack.c.bf16 %v482_v3, %v3345_v45 }
  0xbe   : > { %2371 = vmatmul.msk.bf16.vlgmr.msra.gmra.mxu2 %vm373_vm0, %v3354_v48  ;;  %v3392_v7 = vpack.c.bf16 %v3379_v2, %v465_v4  ;;  %v873_v32 = vld [vmem:[#allocation2 + $0x62] sm:$0xff]  ;;  %v623_v35 = vpack.c.bf16 %v872_v31, %v871_v22  ;;  %v708_v36 = vpack.c.bf16 %v465_v4, %v3349_v47 }
  0xbf   : > { %2383 = vmatmul.msk.bf16.vlgmr.msra.gmra.mxu3 %vm373_vm0, %v3358_v49  ;;  %1007 = vmatpush.bf16.msra.mxu2 %v1000_v61  ;;  %v878_v34 = vpack.c.bf16 %v873_v32, %v872_v31 }
  0xc0   : > { %1092 = vmatpush.bf16.msra.mxu3 %v1085_v62  ;;  %1179 = vmatpush.bf16.msra.mxu0 %v2822_v30 }
  0xc3   : > { %v479_v59 = vld [vmem:[#allocation2 + $0x31] sm:$0xff]  ;;  %1008 = vmatpush.bf16.msra.mxu2 %v2819_v11 }
  0xc4   : > { %v462_v60 = vld [vmem:[#allocation2 + $0x30] sm:$0xff]  ;;  %v3373_v63 = vpack.c.bf16 %v479_v59, %v478_v56  ;;  %1093 = vmatpush.bf16.msra.mxu3 %v2821_v17  ;;  %v792_v23 = vpack.c.bf16 %v3343_v43, %v479_v59  ;;  %v790_v37 = vld [vmem:[#allocation2 + $0x81] sm:$0xff]  ;;  %v624_v43 = vpack.c.bf16 %v874_v38, %v873_v32 }
  0xc5   : > { %v3375_v0 = vpack.c.bf16 %v462_v60, %v461_v57  ;;  %v870_v21 = vld [vmem:[#allocation2 + $0x32] sm:$0xff]  ;;  %v707_v29 = vpack.c.bf16 %v3347_v46, %v462_v60  ;;  %v875_v39 = vld [vmem:[#allocation2 + $0x82] sm:$0xff]  ;;  %v794_v40 = vpack.c.bf16 %v790_v37, %v3377_v1 }
  0xc6   : > { %v877_v24 = vpack.c.bf16 %v871_v22, %v870_v21  ;;  %v622_v27 = vpack.c.bf16 %v870_v21, %v869_v13  ;;  %v879_v41 = vpack.c.bf16 %v875_v39, %v874_v38  ;;  %v705_v42 = vld [vmem:[#allocation2 + $0x80] sm:$0xff]  ;;  %v1046_v56 = vld [vmem:[#allocation2 + $0x91] sm:$0xff] }
  0xc7   : > { %2370 = vmatmul.msk.bf16.gmra.mxu0 %vm373_vm0, %v3373_v63  ;;  %1009 = vmatpush.bf16.msra.mxu2 %v2818_v25  ;;  %v709_v44 = vpack.c.bf16 %v705_v42, %v3379_v2  ;;  %v965_v57 = vpack.c.bf16 %v961_v55, %v705_v42  ;;  %v1050_v58 = vpack.c.bf16 %v1046_v56, %v790_v37  ;;  %v3497_v55 = vld [vmem:[%s3927_s2] ss:$0 sm:$0xff] }
  0xc8   : > { %2382 = vmatmul.msk.bf16.gmra.mxu1 %vm373_vm0, %v3375_v0  ;;  %1094 = vmatpush.bf16.msra.mxu3 %v2820_v26 }
  0xce   : > { %2372 = vmatmul.msk.bf16.gmra.mxu2 %vm373_vm0, %v3389_v6 }
  0xcf   : > { %2384 = vmatmul.msk.bf16.gmra.mxu3 %vm373_vm0, %v3392_v7 }
  0xd7   : > { %2432 = vmatmul.msk.bf16.vlgmr.msrb.gmra.mxu0 %vm373_vm0, %v791_v14 }
  0xd8   : > { %2449 = vmatmul.msk.bf16.vlgmr.msrb.gmra.mxu1 %vm373_vm0, %v876_v15 }
  0xde   : > { %2398 = vmatmul.msk.bf16.vlgmr.msrb.gmra.mxu2 %vm373_vm0, %v621_v18 }
  0xdf   : > { %2415 = vmatmul.msk.bf16.vlgmr.msrb.gmra.mxu3 %vm373_vm0, %v706_v19 }
  0xe7   : > { %2433 = vmatmul.msk.bf16.gmra.mxu0 %vm373_vm0, %v792_v23 }
  0xe8   : > { %2450 = vmatmul.msk.bf16.gmra.mxu1 %vm373_vm0, %v877_v24 }
  0xee   : > { %2399 = vmatmul.msk.bf16.gmra.mxu2 %vm373_vm0, %v622_v27 }
  0xef   : > { %2416 = vmatmul.msk.bf16.gmra.mxu3 %vm373_vm0, %v707_v29 }
  0xf7   : > { %2434 = vmatmul.msk.bf16.gmra.mxu0 %vm373_vm0, %v793_v33 }
  0xf8   : > { %2451 = vmatmul.msk.bf16.gmra.mxu1 %vm373_vm0, %v878_v34 }
  0xfe   : > { %2400 = vmatmul.msk.bf16.gmra.mxu2 %vm373_vm0, %v623_v35 }
  0xff   : > { %2417 = vmatmul.msk.bf16.gmra.mxu3 %vm373_vm0, %v708_v36 }
 0x107   : > { %2435 = vmatmul.msk.bf16.gmra.mxu0 %vm373_vm0, %v794_v40 }
 0x108   : > { %2452 = vmatmul.msk.bf16.gmra.mxu1 %vm373_vm0, %v879_v41 }
 0x10e   : > { %2401 = vmatmul.msk.bf16.gmra.mxu2 %vm373_vm0, %v624_v43 }
 0x10f   : > { %2418 = vmatmul.msk.bf16.gmra.mxu3 %vm373_vm0, %v709_v44 }
 0x117   : > { %2500 = vmatmul.msk.bf16.vlgmr.msra.gmra.mxu0 %vm373_vm0, %v622_v27 }
 0x11e   : > { %2466 = vmatmul.msk.bf16.vlgmr.msra.gmra.mxu2 %vm373_vm0, %v3375_v0 }
 0x11f   : > { %2483 = vmatmul.msk.bf16.vlgmr.msra.gmra.mxu3 %vm373_vm0, %v3373_v63 }
 0x127   : > { %2501 = vmatmul.msk.bf16.gmra.mxu0 %vm373_vm0, %v623_v35 }
 0x12e   : > { %2467 = vmatmul.msk.bf16.gmra.mxu2 %vm373_vm0, %v3358_v49  ;;  %v1135_v49 = vpack.c.bf16 %v1131_v52, %v875_v39 }
 0x12f   : > { %2484 = vmatmul.msk.bf16.gmra.mxu3 %vm373_vm0, %v3354_v48 }
 0x134   : > { %v534_v45 = vpop.f32.mrf.mxu0 }
 0x137   : > { %2502 = vmatmul.msk.bf16.gmra.mxu0 %vm373_vm0, %v624_v43 }
 0x13c   : > { %v536_v46 = vpop.f32.mrf.mxu0 }
 0x13e   : > { %2468 = vmatmul.msk.bf16.gmra.mxu2 %vm373_vm0, %v3392_v7 }
 0x13f   : > { %2485 = vmatmul.msk.bf16.gmra.mxu3 %vm373_vm0, %v3389_v6  ;;  %v593_v6 = vpop.f32.mrf.mxu1 }
 0x140   : > { %v594_v29 = vadd.f32 %v593_v6, %v534_v45 }
 0x141   : > { %v544_v47 = vpop.f32.mrf.mxu2 }
 0x142   : > { %v603_v50 = vpop.f32.mrf.mxu3 }
 0x143   : > { %v3455_v51 = vadd.f32 %v603_v50, %v544_v47 }
 0x144   : > { %v539_v53 = vpop.f32.mrf.mxu0 }
 0x147   : > { %2503 = vmatmul.msk.bf16.gmra.mxu0 %vm373_vm0, %v1135_v49  ;;  %v595_v12 = vpop.f32.mrf.mxu1 }
 0x148   : > { %v596_v35 = vadd.f32 %v595_v12, %v536_v46 }
 0x149   : > { %v3458_v48 = vpop.f32.mrf.mxu2 }
 0x14a   : > { %v3460_v54 = vpop.f32.mrf.mxu3 }
 0x14c   : > { %v3462_v59 = vpop.f32.mrf.mxu0 }
 0x14e   : > { %2469 = vmatmul.msk.bf16.gmra.mxu2 %vm373_vm0, %v965_v57 }
 0x14f   : > { %2486 = vmatmul.msk.bf16.gmra.mxu3 %vm373_vm0, %v1050_v58  ;;  %v598_v16 = vpop.f32.mrf.mxu1 }
 0x150   : > { %v599_v44 = vadd.f32 %v598_v16, %v539_v53 }
 0x151   : > { %v549_v60 = vpop.f32.mrf.mxu2 }
 0x152   : > { %v608_v61 = vpop.f32.mrf.mxu3 }
 0x153   : > { %v3466_v62 = vadd.f32 %v608_v61, %v549_v60 }
 0x154   : > { %v840_v63 = vpop.f32.mrf.mxu0 }
 0x157   : > { %v600_v20 = vpop.f32.mrf.mxu1 }
 0x159   : > { %v3468_v0 = vpop.f32.mrf.mxu2 }
 0x15a   : > { %v3470_v1 = vpop.f32.mrf.mxu3 }
 0x15c   : > { %v842_v2 = vpop.f32.mrf.mxu0 }
 0x15f   : > { %v925_v25 = vpop.f32.mrf.mxu1 }
 0x161   : > { %v670_v3 = vpop.f32.mrf.mxu2 }
 0x162   : > { %v755_v4 = vpop.f32.mrf.mxu3  ;;  %v690_v30 = vadd.f32 %v670_v3, %v594_v29 }
 0x164   : > { %v845_v5 = vpop.f32.mrf.mxu0  ;;  %v775_v32 = vadd.f32 %v755_v4, %v690_v30 }
 0x166   : > { %v860_v37 = vadd.f32 %v840_v63, %v775_v32  ;;  %v601_v63 = vadd.f32 %v600_v20, %v3462_v59 }
 0x167   : > { %v927_v36 = vpop.f32.mrf.mxu1 }
 0x168   : > { %v945_v41 = vadd.f32 %v925_v25, %v860_v37 }
 0x169   : > { %v672_v7 = vpop.f32.mrf.mxu2 }
 0x16a   : > { %v757_v8 = vpop.f32.mrf.mxu3  ;;  %v691_v38 = vadd.f32 %v672_v7, %v596_v35 }
 0x16c   : > { %v3472_v9 = vpop.f32.mrf.mxu0  ;;  %v776_v39 = vadd.f32 %v757_v8, %v691_v38  ;;  %v606_v38 = vadd.f32 %v3460_v54, %v3458_v48 }
 0x16e   : > { %v861_v45 = vadd.f32 %v842_v2, %v776_v39 }
 0x16f   : > { %v930_v50 = vpop.f32.mrf.mxu1 }
 0x170   : > { %v946_v57 = vadd.f32 %v927_v36, %v861_v45 }
 0x171   : > { %v675_v10 = vpop.f32.mrf.mxu2 }
 0x172   : > { %v760_v11 = vpop.f32.mrf.mxu3  ;;  %v692_v52 = vadd.f32 %v675_v10, %v599_v44 }
 0x174   : > { %v3474_v13 = vpop.f32.mrf.mxu0  ;;  %v777_v56 = vadd.f32 %v760_v11, %v692_v52 }
 0x176   : > { %v862_v2 = vadd.f32 %v845_v5, %v777_v56  ;;  %v2828_v56 = vld [vmem:[%s3928_s3 + $0x20] sm:$0xff] }
 0x177   : > { %v932_v8 = vpop.f32.mrf.mxu1  ;;  %1432 = vmatpush.bf16.msrb.mxu2 %v2828_v56 }
 0x178   : > { %v947_v11 = vadd.f32 %v930_v50, %v862_v2  ;;  %v611_v2 = vadd.f32 %v3470_v1, %v3468_v0  ;;  %v2836_v0 = vld [vmem:[%s3928_s3 + $0x60] sm:$0xff] }
 0x179   : > { %v677_v14 = vpop.f32.mrf.mxu2 }
 0x17a   : > { %v762_v15 = vpop.f32.mrf.mxu3  ;;  %v693_v6 = vadd.f32 %v677_v14, %v601_v63 }
 0x17c   : > { %v3476_v17 = vpop.f32.mrf.mxu0  ;;  %v778_v12 = vadd.f32 %v762_v15, %v693_v6 }
 0x17e   : > { %v863_v59 = vadd.f32 %v3472_v9, %v778_v12 }
 0x17f   : > { %v935_v35 = vpop.f32.mrf.mxu1 }
 0x180   : > { %v948_v37 = vadd.f32 %v932_v8, %v863_v59  ;;  %v2826_v8 = vld [vmem:[%s3928_s3 + $0x10] sm:$0xff] }
 0x181   : > { %v680_v18 = vpop.f32.mrf.mxu2 }
 0x182   : > { %v765_v19 = vpop.f32.mrf.mxu3  ;;  %v694_v20 = vadd.f32 %v680_v18, %v3455_v51 }
 0x184   : > { %v3478_v21 = vpop.f32.mrf.mxu0  ;;  %v779_v36 = vadd.f32 %v765_v19, %v694_v20 }
 0x186   : > { %v864_v51 = vadd.f32 %v3474_v13, %v779_v36 }
 0x189   : > { %v3480_v22 = vpop.f32.mrf.mxu2 }
 0x18a   : > { %v3482_v23 = vpop.f32.mrf.mxu3  ;;  %v695_v9 = vadd.f32 %v3480_v22, %v606_v38 }
 0x18c   : > { %v3484_v24 = vpop.f32.mrf.mxu0  ;;  %v780_v19 = vadd.f32 %v3482_v23, %v695_v9  ;;  %v2833_v23 = vld [vmem:[%s3928_s3 + $0x48] sm:$0xff] }
 0x18d   : > { %1361 = vmatpush.bf16.msra.mxu1 %v2833_v23 }
 0x191   : > { %v3486_v26 = vpop.f32.mrf.mxu2 }
 0x192   : > { %v3488_v27 = vpop.f32.mrf.mxu3  ;;  %v696_v13 = vadd.f32 %v3486_v26, %v3466_v62  ;;  %v2832_v26 = vld [vmem:[%s3928_s3 + $0x40] sm:$0xff] }
 0x193   : > { %1362 = vmatpush.bf16.msra.mxu1 %v2832_v26 }
 0x194   : > { %v1181_v31 = vpop.f32.mrf.mxu0 }
 0x199   : > { %v3490_v33 = vpop.f32.mrf.mxu2 }
 0x19a   : > { %v3492_v34 = vpop.f32.mrf.mxu3 }
 0x19c   : > { %v1183_v40 = vpop.f32.mrf.mxu0 }
 0x1a1   : > { %v1011_v42 = vpop.f32.mrf.mxu2 }
 0x1a2   : > { %v1096_v43 = vpop.f32.mrf.mxu3  ;;  %v1031_v47 = vadd.f32 %v1011_v42, %v945_v41 }
 0x1a4   : > { %v1116_v49 = vadd.f32 %v1096_v43, %v1031_v47  ;;  %v1186_v53 = vpop.f32.mrf.mxu0  ;;  %v949_v47 = vadd.f32 %v935_v35, %v864_v51  ;;  %v2830_v51 = vld [vmem:[%s3928_s3 + $0x30] sm:$0xff] }
 0x1a6   : > { %v1201_v46 = vadd.f32 %v1181_v31, %v1116_v49  ;;  %v937_v49 = vpop.f32.mrf.mxu1 }
 0x1a8   : > { %v1213_v58 = vadd.f32 %v3497_v55, %v1201_v46  ;;  %v865_v46 = vadd.f32 %v3476_v17, %v780_v19  ;;  %v2838_v17 = vld [vmem:[%s3928_s3 + $0x70] sm:$0xff]  ;;  %v2843_v19 = vld [vmem:[%s3928_s3 + $0x98] sm:$0xff] }
 0x1a9   : > { %v1013_v60 = vpop.f32.mrf.mxu2  ;;  %1526 = vmatpush.bf16.msrb.mxu3 %v2838_v17  ;;  %1628 = vmatpush.bf16.msrb.mxu0 %v2843_v19  ;;  %v2867_v19 = vld [vmem:[%s3928_s3 + $0x158] sm:$0xff] }
 0x1aa   : > { %v1098_v61 = vpop.f32.mrf.mxu3  ;;  %v1032_v3 = vadd.f32 %v1013_v60, %v946_v57  ;;  %v1221_v4 = vmax.f32 %v1213_v58, 0.0  ;;  %v2827_v57 = vld [vmem:[%s3928_s3 + $0x18] sm:$0xff]  ;;  %v2837_v58 = vld [vmem:[%s3928_s3 + $0x68] sm:$0xff]  ;;  %v781_v60 = vadd.f32 %v3488_v27, %v696_v13  ;;  %v950_v63 = vadd.f32 %v937_v49, %v865_v46  ;;  %v1271_v46 = vld [vmem:[#allocation3] sm:$0xff] }
 0x1ab   : > { %1433 = vmatpush.bf16.msrb.mxu2 %v2827_v57  ;;  %v2831_v27 = vld [vmem:[%s3928_s3 + $0x38] sm:$0xff]  ;;  %v1293_v49 = vld [vmem:[#allocation3 + $0x1] sm:$0xff] }
 0x1ac   : > { %v1117_v7 = vadd.f32 %v1098_v61, %v1032_v3  ;;  %1237 = vrot.lane.b32.xlu2 %v1221_v4, %s3032_s14  ;;  %v1188_v5 = vpop.f32.mrf.mxu0  ;;  %v866_v1 = vadd.f32 %v3478_v21, %v781_v60  ;;  %1363 = vmatpush.bf16.msra.mxu1 %v2831_v27  ;;  %v1458_v13 = vld [vmem:[#allocation3 + $0x2] sm:$0xff]  ;;  %v2847_v57 = vld [vmem:[%s3928_s3 + $0xb8] sm:$0xff]  ;;  %v2846_v60 = vld [vmem:[%s3928_s3 + $0xb0] sm:$0xff] }
 0x1ad   : > { %1527 = vmatpush.bf16.msrb.mxu3 %v2837_v58 }
 0x1ae   : > { %v1202_v10 = vadd.f32 %v1183_v40, %v1117_v7 }
 0x1af   : > { %1434 = vmatpush.bf16.msrb.mxu2 %v2826_v8 }
 0x1b0   : > { %v1214_v16 = vadd.f32 %v3497_v55, %v1202_v10  ;;  %v697_v10 = vadd.f32 %v3490_v33, %v611_v2  ;;  %1364 = vmatpush.bf16.msra.mxu1 %v2830_v51  ;;  %v2853_v2 = vld [vmem:[%s3928_s3 + $0xe8] sm:$0xff] }
 0x1b1   : > { %v1016_v25 = vpop.f32.mrf.mxu2  ;;  %1528 = vmatpush.bf16.msrb.mxu3 %v2836_v0 }
 0x1b2   : > { %v1101_v29 = vpop.f32.mrf.mxu3  ;;  %v1033_v30 = vadd.f32 %v1016_v25, %v947_v11  ;;  %v1222_v31 = vmax.f32 %v1214_v16, 0.0  ;;  %v940_v11 = vpop.f32.mrf.mxu1  ;;  %v782_v21 = vadd.f32 %v3492_v34, %v697_v10 }
 0x1b3   : > { %v951_v33 = vadd.f32 %v940_v11, %v866_v1  ;;  %1435 = vmatpush.bf16.msrb.mxu2 %v2825_v28  ;;  %v2868_v28 = vld [vmem:[%s3928_s3 + $0x160] sm:$0xff] }
 0x1b4   : > { %v1118_v14 = vadd.f32 %v1101_v29, %v1033_v30  ;;  %1239 = vrot.lane.b32.xlu0 %v1222_v31, %s3032_s14  ;;  %v1191_v43 = vpop.f32.mrf.mxu0  ;;  %v867_v34 = vadd.f32 %v3484_v24, %v782_v21  ;;  %v2852_v21 = vld [vmem:[%s3928_s3 + $0xe0] sm:$0xff] }
 0x1b6   : > { %v1203_v32 = vadd.f32 %v1186_v53, %v1118_v14 }
 0x1b8   : > { %v1215_v15 = vadd.f32 %v3497_v55, %v1203_v32 }
 0x1b9   : > { %v1018_v39 = vpop.f32.mrf.mxu2 }
 0x1ba   : > { %v1103_v40 = vpop.f32.mrf.mxu3  ;;  %v1034_v41 = vadd.f32 %v1018_v39, %v948_v37  ;;  %v1223_v42 = vmax.f32 %v1215_v15, 0.0  ;;  %v942_v32 = vpop.f32.mrf.mxu1 }
 0x1bb   : > { %v952_v35 = vadd.f32 %v942_v32, %v867_v34  ;;  %v2862_v32 = vld [vmem:[%s3928_s3 + $0x130] sm:$0xff] }
 0x1bc   : > { %v1119_v18 = vadd.f32 %v1103_v40, %v1034_v41  ;;  %1241 = vrot.lane.b32.xlu1 %v1223_v42, %s3032_s14  ;;  %v1193_v61 = vpop.f32.mrf.mxu0 }
 0x1be   : > { %v1204_v44 = vadd.f32 %v1188_v5, %v1119_v18  ;;  %v2835_v18 = vld [vmem:[%s3928_s3 + $0x58] sm:$0xff] }
 0x1bf   : > { %1529 = vmatpush.bf16.msrb.mxu3 %v2835_v18  ;;  %v2860_v18 = vld [vmem:[%s3928_s3 + $0x120] sm:$0xff] }
 0x1c0   : > { %v1216_v50 = vadd.f32 %v3497_v55, %v1204_v44  ;;  %v2834_v44 = vld [vmem:[%s3928_s3 + $0x50] sm:$0xff] }
 0x1c1   : > { %v1021_v45 = vpop.f32.mrf.mxu2 }
 0x1c2   : > { %v1106_v48 = vpop.f32.mrf.mxu3  ;;  %v1035_v54 = vadd.f32 %v1021_v45, %v949_v47  ;;  %v1224_v52 = vmax.f32 %v1216_v50, 0.0  ;;  %v2842_v47 = vld [vmem:[%s3928_s3 + $0x90] sm:$0xff]  ;;  %v2841_v50 = vld [vmem:[%s3928_s3 + $0x88] sm:$0xff] }
 0x1c3   : > { %1530 = vmatpush.bf16.msrb.mxu3 %v2834_v44  ;;  %1629 = vmatpush.bf16.msrb.mxu0 %v2842_v47 }
 0x1c4   : > { %v1120_v22 = vadd.f32 %v1106_v48, %v1035_v54  ;;  %1243 = vrot.lane.b32.xlu2 %v1224_v52, %s3032_s14  ;;  %v1196_v20 = vpop.f32.mrf.mxu0  ;;  %v2848_v48 = vld [vmem:[%s3928_s3 + $0xc0] sm:$0xff]  ;;  %v2839_v52 = vld [vmem:[%s3928_s3 + $0x78] sm:$0xff] }
 0x1c5   : > { %v2840_v54 = vld [vmem:[%s3928_s3 + $0x80] sm:$0xff] }
 0x1c6   : > { %v1205_v62 = vadd.f32 %v1191_v43, %v1120_v22  ;;  %v2824_v43 = vld [vmem:[%s3928_s3] sm:$0xff] }
 0x1c7   : > { %1436 = vmatpush.bf16.msrb.mxu2 %v2824_v43  ;;  %1630 = vmatpush.bf16.msrb.mxu0 %v2841_v50 }
 0x1c8   : > { %v1217_v53 = vadd.f32 %v3497_v55, %v1205_v62 }
 0x1c9   : > { %v1023_v3 = vpop.f32.mrf.mxu2 }
 0x1ca   : > { %v1108_v4 = vpop.f32.mrf.mxu3  ;;  %v1036_v6 = vadd.f32 %v1023_v3, %v950_v63  ;;  %v1225_v7 = vmax.f32 %v1217_v53, 0.0  ;;  %v2845_v63 = vld [vmem:[%s3928_s3 + $0xa8] sm:$0xff] }
 0x1cb   : > { %1631 = vmatpush.bf16.msrb.mxu0 %v2840_v54  ;;  %1832 = vmatpush.bf16.msra.mxu2 %v2853_v2 }
 0x1cc   : > { %v1121_v12 = vadd.f32 %v1108_v4, %v1036_v6  ;;  %1245 = vrot.lane.b32.xlu0 %v1225_v7, %s3032_s14  ;;  %v1198_v40 = vpop.f32.mrf.mxu0  ;;  %v2858_v6 = vld [vmem:[%s3928_s3 + $0x110] sm:$0xff] }
 0x1cd   : > { %1935 = vmatpush.bf16.msra.mxu3 %v2858_v6 }
 0x1ce   : > { %v1206_v16 = vadd.f32 %v1193_v61, %v1121_v12 }
 0x1cf   : > { %1632 = vmatpush.bf16.msrb.mxu0 %v2839_v52  ;;  %1833 = vmatpush.bf16.msra.mxu2 %v2852_v21 }
 0x1d0   : > { %v1218_v25 = vadd.f32 %v3497_v55, %v1206_v16 }
 0x1d1   : > { %v1026_v29 = vpop.f32.mrf.mxu2 }
 0x1d2   : > { %v1111_v30 = vpop.f32.mrf.mxu3  ;;  %v1037_v31 = vadd.f32 %v1026_v29, %v951_v33  ;;  %v1226_v59 = vmax.f32 %v1218_v25, 0.0  ;;  %v2857_v33 = vld [vmem:[%s3928_s3 + $0x108] sm:$0xff]  ;;  %v2844_v25 = vld [vmem:[%s3928_s3 + $0xa0] sm:$0xff]  ;;  %v2863_v29 = vld [vmem:[%s3928_s3 + $0x138] sm:$0xff] }
 0x1d3   : > { %1936 = vmatpush.bf16.msra.mxu3 %v2857_v33  ;;  %2037 = vmatpush.bf16.msra.mxu0 %v2863_v29 }
 0x1d4   : > { %v1122_v5 = vadd.f32 %v1111_v30, %v1037_v31  ;;  %1247 = vrot.lane.b32.xlu1 %v1226_v59, %s3032_s14  ;;  %v2851_v30 = vld [vmem:[%s3928_s3 + $0xd8] sm:$0xff]  ;;  %v2856_v31 = vld [vmem:[%s3928_s3 + $0x100] sm:$0xff] }
 0x1d5   : > { %1834 = vmatpush.bf16.msra.mxu2 %v2851_v30 }
 0x1d6   : > { %v1207_v14 = vadd.f32 %v1196_v20, %v1122_v5  ;;  %v2850_v5 = vld [vmem:[%s3928_s3 + $0xd0] sm:$0xff] }
 0x1d7   : > { %1937 = vmatpush.bf16.msra.mxu3 %v2856_v31  ;;  %2038 = vmatpush.bf16.msra.mxu0 %v2862_v32 }
 0x1d8   : > { %v1219_v24 = vadd.f32 %v3497_v55, %v1207_v14  ;;  %v2855_v14 = vld [vmem:[%s3928_s3 + $0xf8] sm:$0xff] }
 0x1d9   : > { %v1028_v36 = vpop.f32.mrf.mxu2  ;;  %1835 = vmatpush.bf16.msra.mxu2 %v2850_v5 }
 0x1da   : > { %v1038_v37 = vadd.f32 %v1028_v36, %v952_v35  ;;  %v1227_v15 = vmax.f32 %v1219_v24, 0.0  ;;  %v1113_v38 = vpop.f32.mrf.mxu3  ;;  %v2861_v35 = vld [vmem:[%s3928_s3 + $0x128] sm:$0xff]  ;;  %v2854_v36 = vld [vmem:[%s3928_s3 + $0xf0] sm:$0xff] }
 0x1db   : > { %1938 = vmatpush.bf16.msra.mxu3 %v2855_v14  ;;  %v2849_v24 = vld [vmem:[%s3928_s3 + $0xc8] sm:$0xff]  ;;  %2039 = vmatpush.bf16.msra.mxu0 %v2861_v35 }
 0x1dc   : > { %v1123_v39 = vadd.f32 %v1113_v38, %v1038_v37  ;;  %1249 = vrot.lane.b32.xlu2 %v1227_v15, %s3032_s14 }
 0x1dd   : > { %1836 = vmatpush.bf16.msra.mxu2 %v2849_v24 }
 0x1de   : > { %v1208_v41 = vadd.f32 %v1198_v40, %v1123_v39 }
 0x1df   : > { %1939 = vmatpush.bf16.msra.mxu3 %v2854_v36  ;;  %2040 = vmatpush.bf16.msra.mxu0 %v2860_v18 }
 0x1e0   : > { %v1220_v42 = vadd.f32 %v3497_v55, %v1208_v41  ;;  %v2829_v55 = vld [vmem:[%s3928_s3 + $0x28] sm:$0xff] }
 0x1e1   : > { %1365 = vmatpush.bf16.msra.mxu1 %v2829_v55  ;;  %v2859_v55 = vld [vmem:[%s3928_s3 + $0x118] sm:$0xff] }
 0x1e2   : > { %v1228_v9 = vmax.f32 %v1220_v42, 0.0 }
 0x1e3   : > { %2041 = vmatpush.bf16.msra.mxu0 %v2859_v55 }
 0x1e4   : > { %1251 = vrot.lane.b32.xlu0 %v1228_v9, %s3032_s14 }
 0x1e5   : > { %1730 = vmatpush.bf16.msrb.mxu1 %v2848_v48 }
 0x1e9   : > { %1731 = vmatpush.bf16.msrb.mxu1 %v2847_v57 }
 0x1ed   : > { %1732 = vmatpush.bf16.msrb.mxu1 %v2846_v60 }
 0x1f1   : > { %1733 = vmatpush.bf16.msrb.mxu1 %v2845_v63 }
 0x1f5   : > { %1734 = vmatpush.bf16.msrb.mxu1 %v2844_v25 }
 0x206   : > { %v1238_v45 = vpop.permute.xlu2 %1237 }
 0x207   : > { %1263 = vst.msk [vmem:[#allocation3 + $0x11] sm:$0xff] %vm1262_vm6, %v1238_v45 }
 0x20e   : > { %v3637_v22 = vld [vmem:[#allocation3 + $0x11] sm:$0xff] }
 0x20f   : > { %v1272_v23 = vld [vmem:[#allocation3 + $0x10] sm:$0xff]  ;;  %v1301_v17 = vpack.c.bf16 %v3637_v22, %v1293_v49 }
 0x210   : > { %v3639_v56 = vld [vmem:[#allocation3 + $0x12] sm:$0xff]  ;;  %v1279_v62 = vpack.c.bf16 %v1272_v23, %v1271_v46 }
 0x211   : > { %v1466_v26 = vpack.c.bf16 %v3639_v56, %v1458_v13  ;;  %2534 = vmatmul.msk.bf16.vlgmr.msra.gmra.mxu1 %vm395_vm4, %v1301_v17 }
 0x212   : > { %2558 = vmatmul.msk.bf16.vlgmr.msrb.gmra.mxu2 %vm395_vm4, %v1279_v62  ;;  %2139 = vmatpush.bf16.msra.mxu1 %v2868_v28  ;;  %v2866_v62 = vld [vmem:[%s3928_s3 + $0x150] sm:$0xff] }
 0x213   : > { %2592 = vmatmul.msk.bf16.vlgmr.msrb.gmra.mxu3 %vm395_vm4, %v1466_v26 }
 0x216   : > { %2140 = vmatpush.bf16.msra.mxu1 %v2867_v19 }
 0x21a   : > { %2141 = vmatpush.bf16.msra.mxu1 %v2866_v62 }
 0x21e   : > { %v1244_v58 = vpop.permute.xlu2 %1243 }
 0x21f   : > { %1266 = vst.msk [vmem:[#allocation3 + $0x41] sm:$0xff] %vm1262_vm6, %v1244_v58  ;;  %v2865_v58 = vld [vmem:[%s3928_s3 + $0x148] sm:$0xff] }
 0x220   : > { %2142 = vmatpush.bf16.msra.mxu1 %v2865_v58 }
 0x226   : > { %v1240_v61 = vpop.permute.xlu0 %1239  ;;  %v1563_v20 = vld [vmem:[#allocation3 + $0x40] sm:$0xff] }
 0x227   : > { %1264 = vst.msk [vmem:[#allocation3 + $0x21] sm:$0xff] %vm1262_vm6, %v1240_v61  ;;  %v1297_v37 = vld [vmem:[#allocation3 + $0x41] sm:$0xff] }
 0x228   : > { %v1462_v15 = vld [vmem:[#allocation3 + $0x42] sm:$0xff] }
 0x22e   : > { %v1242_v53 = vpop.permute.xlu1 %1241  ;;  %v1561_v3 = vld [vmem:[#allocation3 + $0x20] sm:$0xff] }
 0x22f   : > { %1265 = vst.msk [vmem:[#allocation3 + $0x31] sm:$0xff] %vm1262_vm6, %v1242_v53  ;;  %v1568_v4 = vpack.c.bf16 %v1561_v3, %v1272_v23  ;;  %v3665_v7 = vld [vmem:[#allocation3 + $0x21] sm:$0xff] }
 0x230   : > { %v3667_v27 = vld [vmem:[#allocation3 + $0x22] sm:$0xff]  ;;  %v1670_v26 = vpack.c.bf16 %v3665_v7, %v3637_v22 }
 0x231   : > { %2626 = vmatmul.msk.bf16.vlgmr.msrb.gmra.mxu0 %vm395_vm4, %v1568_v4  ;;  %v1772_v57 = vpack.c.bf16 %v3667_v27, %v3639_v56  ;;  %v2864_v56 = vld [vmem:[%s3928_s3 + $0x140] sm:$0xff]  ;;  %v1874_v4 = vld [vmem:[#allocation3 + $0x90] sm:$0xff] }
 0x232   : > { %2143 = vmatpush.bf16.msra.mxu1 %v2864_v56 }
 0x236   : > { %v1250_v8 = vpop.permute.xlu2 %1249  ;;  %v3669_v0 = vld [vmem:[#allocation3 + $0x31] sm:$0xff] }
 0x237   : > { %v1274_v1 = vld [vmem:[#allocation3 + $0x30] sm:$0xff]  ;;  %1269 = vst.msk [vmem:[#allocation3 + $0x71] sm:$0xff] %vm1262_vm6, %v1250_v8  ;;  %v3676_v12 = vpack.c.bf16 %v3669_v0, %v3665_v7  ;;  %v1671_v22 = vpack.c.bf16 %v1297_v37, %v3669_v0 }
 0x238   : > { %v3671_v10 = vld [vmem:[#allocation3 + $0x32] sm:$0xff]  ;;  %v3678_v11 = vpack.c.bf16 %v1274_v1, %v1561_v3  ;;  %v1569_v34 = vpack.c.bf16 %v1563_v20, %v1274_v1 }
 0x239   : > { %v3682_v16 = vpack.c.bf16 %v3671_v10, %v3667_v27  ;;  %2535 = vmatmul.msk.bf16.gmra.mxu1 %vm395_vm4, %v3676_v12  ;;  %v1773_v60 = vpack.c.bf16 %v1462_v15, %v3671_v10  ;;  %v1976_v27 = vld [vmem:[#allocation3 + $0x91] sm:$0xff] }
 0x23a   : > { %2559 = vmatmul.msk.bf16.gmra.mxu2 %vm395_vm4, %v3678_v11 }
 0x23b   : > { %2593 = vmatmul.msk.bf16.gmra.mxu3 %vm395_vm4, %v3682_v16 }
 0x23e   : > { %v1246_v59 = vpop.permute.xlu0 %1245  ;;  %v1300_v48 = vld [vmem:[#allocation3 + $0x71] sm:$0xff] }
 0x23f   : > { %1267 = vst.msk [vmem:[#allocation3 + $0x51] sm:$0xff] %vm1262_vm6, %v1246_v59  ;;  %v1278_v54 = vld [vmem:[#allocation3 + $0x70] sm:$0xff] }
 0x240   : > { %v1465_v46 = vld [vmem:[#allocation3 + $0x72] sm:$0xff] }
 0x241   : > { %2627 = vmatmul.msk.bf16.gmra.mxu0 %vm395_vm4, %v1569_v34 }
 0x246   : > { %v1248_v38 = vpop.permute.xlu1 %1247  ;;  %v1298_v39 = vld [vmem:[#allocation3 + $0x51] sm:$0xff] }
 0x247   : > { %v1276_v40 = vld [vmem:[#allocation3 + $0x50] sm:$0xff]  ;;  %1268 = vst.msk [vmem:[#allocation3 + $0x61] sm:$0xff] %vm1262_vm6, %v1248_v38  ;;  %v1303_v42 = vpack.c.bf16 %v1298_v39, %v1297_v37 }
 0x248   : > { %v1463_v41 = vld [vmem:[#allocation3 + $0x52] sm:$0xff]  ;;  %v1281_v9 = vpack.c.bf16 %v1276_v40, %v1563_v20 }
 0x249   : > { %v3729_v51 = vpack.c.bf16 %v1463_v41, %v1462_v15  ;;  %2536 = vmatmul.msk.bf16.gmra.mxu1 %vm395_vm4, %v1303_v42  ;;  %v2078_v20 = vld [vmem:[#allocation3 + $0x92] sm:$0xff] }
 0x24a   : > { %2560 = vmatmul.msk.bf16.gmra.mxu2 %vm395_vm4, %v1281_v9 }
 0x24b   : > { %2594 = vmatmul.msk.bf16.gmra.mxu3 %vm395_vm4, %v3729_v51 }
 0x24e   : > { %v1565_v43 = vld [vmem:[#allocation3 + $0x60] sm:$0xff] }
 0x24f   : > { %v1570_v44 = vpack.c.bf16 %v1565_v43, %v1276_v40  ;;  %v1299_v47 = vld [vmem:[#allocation3 + $0x61] sm:$0xff]  ;;  %v1282_v49 = vpack.c.bf16 %v1278_v54, %v1565_v43 }
 0x250   : > { %v1464_v50 = vld [vmem:[#allocation3 + $0x62] sm:$0xff]  ;;  %v1304_v52 = vpack.c.bf16 %v1300_v48, %v1299_v47  ;;  %v1672_v61 = vpack.c.bf16 %v1299_v47, %v1298_v39 }
 0x251   : > { %2628 = vmatmul.msk.bf16.gmra.mxu0 %vm395_vm4, %v1570_v44  ;;  %v1469_v13 = vpack.c.bf16 %v1465_v46, %v1464_v50  ;;  %v1774_v63 = vpack.c.bf16 %v1464_v50, %v1463_v41 }
 0x256   : > { %v1252_v45 = vpop.permute.xlu0 %1251 }
 0x257   : > { %1270 = vst.msk [vmem:[#allocation3 + $0x81] sm:$0xff] %vm1262_vm6, %v1252_v45 }
 0x259   : > { %2537 = vmatmul.msk.bf16.gmra.mxu1 %vm395_vm4, %v1304_v52 }
 0x25a   : > { %2561 = vmatmul.msk.bf16.gmra.mxu2 %vm395_vm4, %v1282_v49 }
 0x25b   : > { %2595 = vmatmul.msk.bf16.gmra.mxu3 %vm395_vm4, %v1469_v13 }
 0x25e   : > { %v1567_v23 = vld [vmem:[#allocation3 + $0x80] sm:$0xff] }
 0x25f   : > { %v1571_v17 = vpack.c.bf16 %v1567_v23, %v1278_v54  ;;  %v1669_v53 = vld [vmem:[#allocation3 + $0x81] sm:$0xff]  ;;  %v1878_v7 = vpack.c.bf16 %v1874_v4, %v1567_v23 }
 0x260   : > { %v1771_v3 = vld [vmem:[#allocation3 + $0x82] sm:$0xff]  ;;  %v1673_v2 = vpack.c.bf16 %v1669_v53, %v1300_v48  ;;  %v1980_v8 = vpack.c.bf16 %v1976_v27, %v1669_v53 }
 0x261   : > { %2629 = vmatmul.msk.bf16.gmra.mxu0 %vm395_vm4, %v1571_v17  ;;  %v1775_v6 = vpack.c.bf16 %v1771_v3, %v1465_v46  ;;  %v2082_v14 = vpack.c.bf16 %v2078_v20, %v1771_v3 }
 0x269   : > { %2660 = vmatmul.msk.bf16.vlgmr.msrb.gmra.mxu1 %vm395_vm4, %v1670_v26 }
 0x26a   : > { %2694 = vmatmul.msk.bf16.vlgmr.msra.gmra.mxu2 %vm395_vm4, %v1772_v57 }
 0x26b   : > { %2728 = vmatmul.msk.bf16.vlgmr.msra.gmra.mxu3 %vm395_vm4, %v3678_v11 }
 0x271   : > { %2762 = vmatmul.msk.bf16.vlgmr.msra.gmra.mxu0 %vm395_vm4, %v3676_v12 }
 0x279   : > { %2661 = vmatmul.msk.bf16.gmra.mxu1 %vm395_vm4, %v1671_v22 }
 0x27a   : > { %2695 = vmatmul.msk.bf16.gmra.mxu2 %vm395_vm4, %v1773_v60 }
 0x27b   : > { %2729 = vmatmul.msk.bf16.gmra.mxu3 %vm395_vm4, %v1281_v9 }
 0x281   : > { %2763 = vmatmul.msk.bf16.gmra.mxu0 %vm395_vm4, %v1303_v42 }
 0x289   : > { %2662 = vmatmul.msk.bf16.gmra.mxu1 %vm395_vm4, %v1672_v61 }
 0x28a   : > { %2696 = vmatmul.msk.bf16.gmra.mxu2 %vm395_vm4, %v1774_v63 }
 0x28b   : > { %2730 = vmatmul.msk.bf16.gmra.mxu3 %vm395_vm4, %v1282_v49 }
 0x28e   : > { %v1367_v0 = vpop.f32.mrf.mxu1 }
 0x291   : > { %2764 = vmatmul.msk.bf16.gmra.mxu0 %vm395_vm4, %v1304_v52 }
 0x295   : > { %v1438_v12 = vpop.f32.mrf.mxu2 }
 0x296   : > { %v1369_v1 = vpop.f32.mrf.mxu1  ;;  %v1532_v21 = vpop.f32.mrf.mxu3  ;;  %v1439_v49 = vadd.f32 %v1438_v12, %v1367_v0 }
 0x298   : > { %v1552_v17 = vadd.f32 %v1532_v21, %v1439_v49 }
 0x299   : > { %2663 = vmatmul.msk.bf16.gmra.mxu1 %vm395_vm4, %v1673_v2 }
 0x29a   : > { %2697 = vmatmul.msk.bf16.gmra.mxu2 %vm395_vm4, %v1775_v6 }
 0x29b   : > { %2731 = vmatmul.msk.bf16.gmra.mxu3 %vm395_vm4, %v1878_v7 }
 0x29d   : > { %v1440_v29 = vpop.f32.mrf.mxu2 }
 0x29e   : > { %v1534_v30 = vpop.f32.mrf.mxu3  ;;  %v1441_v26 = vadd.f32 %v1440_v29, %v1369_v1 }
 0x2a0   : > { %v1553_v56 = vadd.f32 %v1534_v30, %v1441_v26 }
 0x2a1   : > { %2765 = vmatmul.msk.bf16.gmra.mxu0 %vm395_vm4, %v1980_v8  ;;  %v3839_v8 = vld [vmem:[%s3929_s4] ss:$0 sm:$0xff] }
 0x2a9   : > { %2796 = vmatmul.msk.bf16.vlgmr.msra.gmra.mxu1 %vm395_vm4, %v3682_v16 }
 0x2ae   : > { %v1634_v33 = vpop.f32.mrf.mxu0 }
 0x2af   : > { %v1654_v62 = vadd.f32 %v1634_v33, %v1552_v17 }
 0x2b6   : > { %v1372_v10 = vpop.f32.mrf.mxu1  ;;  %v1636_v59 = vpop.f32.mrf.mxu0 }
 0x2b7   : > { %v1655_v53 = vadd.f32 %v1636_v59, %v1553_v56 }
 0x2b9   : > { %2797 = vmatmul.msk.bf16.gmra.mxu1 %vm395_vm4, %v3729_v51 }
 0x2bd   : > { %v1443_v16 = vpop.f32.mrf.mxu2 }
 0x2be   : > { %v3790_v11 = vpop.f32.mrf.mxu1  ;;  %v1537_v34 = vpop.f32.mrf.mxu3  ;;  %v1444_v3 = vadd.f32 %v1443_v16, %v1372_v10 }
 0x2bf   : > { %v1639_v32 = vpop.f32.mrf.mxu0 }
 0x2c0   : > { %v1554_v6 = vadd.f32 %v1537_v34, %v1444_v3 }
 0x2c2   : > { %v1656_v21 = vadd.f32 %v1639_v32, %v1554_v6 }
 0x2c5   : > { %v1445_v35 = vpop.f32.mrf.mxu2 }
 0x2c6   : > { %v3792_v25 = vpop.f32.mrf.mxu1  ;;  %v1539_v36 = vpop.f32.mrf.mxu3  ;;  %v1446_v33 = vadd.f32 %v1445_v35, %v3790_v11 }
 0x2c7   : > { %v3802_v37 = vpop.f32.mrf.mxu0 }
 0x2c8   : > { %v1555_v34 = vadd.f32 %v1539_v36, %v1446_v33 }
 0x2c9   : > { %2798 = vmatmul.msk.bf16.gmra.mxu1 %vm395_vm4, %v1469_v13 }
 0x2ca   : > { %v1657_v35 = vadd.f32 %v3802_v37, %v1555_v34 }
 0x2cd   : > { %v3804_v15 = vpop.f32.mrf.mxu2 }
 0x2ce   : > { %v3795_v31 = vpop.f32.mrf.mxu1  ;;  %v3806_v39 = vpop.f32.mrf.mxu3 }
 0x2cf   : > { %v3808_v40 = vpop.f32.mrf.mxu0 }
 0x2d5   : > { %v3810_v41 = vpop.f32.mrf.mxu2 }
 0x2d6   : > { %v3797_v5 = vpop.f32.mrf.mxu1  ;;  %v3812_v9 = vpop.f32.mrf.mxu3 }
 0x2d7   : > { %v3814_v28 = vpop.f32.mrf.mxu0 }
 0x2d9   : > { %2799 = vmatmul.msk.bf16.gmra.mxu1 %vm395_vm4, %v2082_v14 }
 0x2dd   : > { %v3816_v18 = vpop.f32.mrf.mxu2 }
 0x2de   : > { %v3800_v24 = vpop.f32.mrf.mxu1  ;;  %v3818_v55 = vpop.f32.mrf.mxu3 }
 0x2df   : > { %v3820_v44 = vpop.f32.mrf.mxu0 }
 0x2e5   : > { %v3822_v19 = vpop.f32.mrf.mxu2 }
 0x2e6   : > { %v1736_v38 = vpop.f32.mrf.mxu1  ;;  %v3826_v50 = vpop.f32.mrf.mxu3 }
 0x2e7   : > { %v3828_v45 = vpop.f32.mrf.mxu0  ;;  %v1756_v57 = vadd.f32 %v1736_v38, %v1654_v62 }
 0x2ed   : > { %v1838_v48 = vpop.f32.mrf.mxu2 }
 0x2ee   : > { %v1738_v42 = vpop.f32.mrf.mxu1  ;;  %v1941_v52 = vpop.f32.mrf.mxu3  ;;  %v1858_v22 = vadd.f32 %v1838_v48, %v1756_v57  ;;  %v1449_v48 = vadd.f32 %v3804_v15, %v3792_v25  ;;  %v1451_v25 = vadd.f32 %v3810_v41, %v3795_v31  ;;  %v1454_v41 = vadd.f32 %v3816_v18, %v3797_v5 }
 0x2ef   : > { %v2043_v46 = vpop.f32.mrf.mxu0  ;;  %v1757_v2 = vadd.f32 %v1738_v42, %v1655_v53  ;;  %v1456_v18 = vadd.f32 %v3822_v19, %v3800_v24 }
 0x2f0   : > { %v1961_v4 = vadd.f32 %v1941_v52, %v1858_v22  ;;  %v1556_v17 = vadd.f32 %v3806_v39, %v1449_v48  ;;  %v1557_v39 = vadd.f32 %v3812_v9, %v1451_v25 }
 0x2f2   : > { %v2063_v7 = vadd.f32 %v2043_v46, %v1961_v4  ;;  %v1658_v37 = vadd.f32 %v3808_v40, %v1556_v17  ;;  %v1659_v31 = vadd.f32 %v3814_v28, %v1557_v39 }
 0x2f5   : > { %v1840_v13 = vpop.f32.mrf.mxu2 }
 0x2f6   : > { %v1741_v51 = vpop.f32.mrf.mxu1  ;;  %v1943_v58 = vpop.f32.mrf.mxu3  ;;  %v1859_v27 = vadd.f32 %v1840_v13, %v1757_v2 }
 0x2f7   : > { %v2045_v61 = vpop.f32.mrf.mxu0  ;;  %v1758_v16 = vadd.f32 %v1741_v51, %v1656_v21 }
 0x2f8   : > { %v1962_v29 = vadd.f32 %v1943_v58, %v1859_v27 }
 0x2fa   : > { %v2064_v14 = vadd.f32 %v2045_v61, %v1962_v29 }
 0x2fd   : > { %v1843_v63 = vpop.f32.mrf.mxu2 }
 0x2fe   : > { %v1743_v43 = vpop.f32.mrf.mxu1  ;;  %v1946_v0 = vpop.f32.mrf.mxu3  ;;  %v1860_v38 = vadd.f32 %v1843_v63, %v1758_v16 }
 0x2ff   : > { %v2048_v30 = vpop.f32.mrf.mxu0  ;;  %v1759_v36 = vadd.f32 %v1743_v43, %v1657_v35 }
 0x300   : > { %v1963_v52 = vadd.f32 %v1946_v0, %v1860_v38  ;;  %v1558_v0 = vadd.f32 %v3818_v55, %v1454_v41 }
 0x302   : > { %v2065_v62 = vadd.f32 %v2048_v30, %v1963_v52  ;;  %v1660_v5 = vadd.f32 %v3820_v44, %v1558_v0 }
 0x305   : > { %v1845_v59 = vpop.f32.mrf.mxu2 }
 0x306   : > { %v3824_v47 = vpop.f32.mrf.mxu1  ;;  %v1948_v11 = vpop.f32.mrf.mxu3  ;;  %v1861_v26 = vadd.f32 %v1845_v59, %v1759_v36  ;;  %v1559_v59 = vadd.f32 %v3826_v50, %v1456_v18 }
 0x307   : > { %v2050_v49 = vpop.f32.mrf.mxu0  ;;  %v1760_v56 = vadd.f32 %v3824_v47, %v1658_v37 }
 0x308   : > { %v1964_v15 = vadd.f32 %v1948_v11, %v1861_v26  ;;  %v1661_v44 = vadd.f32 %v3828_v45, %v1559_v59 }
 0x30a   : > { %v2066_v63 = vadd.f32 %v2050_v49, %v1964_v15 }
 0x30d   : > { %v1848_v13 = vpop.f32.mrf.mxu2 }
 0x30e   : > { %v3830_v54 = vpop.f32.mrf.mxu1  ;;  %v1951_v22 = vpop.f32.mrf.mxu3  ;;  %v1862_v53 = vadd.f32 %v1848_v13, %v1760_v56 }
 0x30f   : > { %v2053_v3 = vpop.f32.mrf.mxu0 }
 0x310   : > { %v1965_v6 = vadd.f32 %v1951_v22, %v1862_v53 }
 0x315   : > { %v1850_v4 = vpop.f32.mrf.mxu2 }
 0x316   : > { %v3832_v23 = vpop.f32.mrf.mxu1  ;;  %v1953_v27 = vpop.f32.mrf.mxu3 }
 0x317   : > { %v2055_v28 = vpop.f32.mrf.mxu0 }
 0x31d   : > { %v1853_v29 = vpop.f32.mrf.mxu2 }
 0x31e   : > { %v3834_v60 = vpop.f32.mrf.mxu1  ;;  %v1956_v34 = vpop.f32.mrf.mxu3 }
 0x326   : > { %v2145_v1 = vpop.f32.mrf.mxu1 }
 0x327   : > { %v2165_v12 = vadd.f32 %v2145_v1, %v2063_v7  ;;  %v1761_v7 = vadd.f32 %v3830_v54, %v1659_v31  ;;  %v2067_v1 = vadd.f32 %v2053_v3, %v1965_v6 }
 0x329   : > { %v2177_v10 = vadd.f32 %v3839_v8, %v2165_v12  ;;  %v1863_v12 = vadd.f32 %v1850_v4, %v1761_v7 }
 0x32b   : > { %v2185_v20 = vmax.f32 %v2177_v10, 0.0  ;;  %v1966_v30 = vadd.f32 %v1953_v27, %v1863_v12  ;;  %v1762_v10 = vadd.f32 %v3832_v23, %v1660_v5  ;;  %v1855_v23 = vpop.f32.mrf.mxu2 }
 0x32d   : > { %2194 = vst.msk [vmem:[%s3844_s28] sm:$0xff] %vm2193_vm7, %v2185_v20  ;;  %v2068_v16 = vadd.f32 %v2055_v28, %v1966_v30  ;;  %v1864_v20 = vadd.f32 %v1853_v29, %v1762_v10 }
 0x32e   : > { %v2147_v32 = vpop.f32.mrf.mxu1 }
 0x32f   : > { %v2166_v42 = vadd.f32 %v2147_v32, %v2064_v14  ;;  %v1967_v24 = vadd.f32 %v1956_v34, %v1864_v20  ;;  %v2058_v32 = vpop.f32.mrf.mxu0 }
 0x331   : > { %v2178_v51 = vadd.f32 %v3839_v8, %v2166_v42  ;;  %v1763_v42 = vadd.f32 %v3834_v60, %v1661_v44  ;;  %v2069_v11 = vadd.f32 %v2058_v32, %v1967_v24 }
 0x333   : > { %v2186_v46 = vmax.f32 %v2178_v51, 0.0  ;;  %v1865_v35 = vadd.f32 %v1855_v23, %v1763_v42  ;;  %v1958_v51 = vpop.f32.mrf.mxu3 }
 0x335   : > { %2195 = vst.msk [vmem:[%s3844_s28 + $0x8] sm:$0xff] %vm2193_vm7, %v2186_v46  ;;  %v1968_v36 = vadd.f32 %v1958_v51, %v1865_v35 }
 0x336   : > { %v2150_v57 = vpop.f32.mrf.mxu1 }
 0x337   : > { %v2167_v58 = vadd.f32 %v2150_v57, %v2065_v62  ;;  %v2060_v46 = vpop.f32.mrf.mxu0 }
 0x338   : > { %v2070_v13 = vadd.f32 %v2060_v46, %v1968_v36 }
 0x339   : > { %v2179_v43 = vadd.f32 %v3839_v8, %v2167_v58 }
 0x33b   : > { %v2187_v61 = vmax.f32 %v2179_v43, 0.0 }
 0x33d   : > { %2196 = vst.msk [vmem:[%s3844_s28 + $0x10] sm:$0xff] %vm2193_vm7, %v2187_v61 }
 0x33e   : > { %v2152_v40 = vpop.f32.mrf.mxu1 }
 0x33f   : > { %v2168_v2 = vadd.f32 %v2152_v40, %v2066_v63 }
 0x341   : > { %v2180_v47 = vadd.f32 %v3839_v8, %v2168_v2 }
 0x343   : > { %v2188_v9 = vmax.f32 %v2180_v47, 0.0 }
 0x345   : > { %2197 = vst.msk [vmem:[%s3844_s28 + $0x18] sm:$0xff] %vm2193_vm7, %v2188_v9 }
 0x346   : > { %v2155_v21 = vpop.f32.mrf.mxu1 }
 0x347   : > { %v2169_v33 = vadd.f32 %v2155_v21, %v2067_v1 }
 0x349   : > { %v2181_v54 = vadd.f32 %v3839_v8, %v2169_v33 }
 0x34b   : > { %v2189_v55 = vmax.f32 %v2181_v54, 0.0 }
 0x34d   : > { %2198 = vst.msk [vmem:[%s3844_s28 + $0x20] sm:$0xff] %vm2193_vm7, %v2189_v55 }
 0x34e   : > { %v2157_v14 = vpop.f32.mrf.mxu1 }
 0x34f   : > { %v2170_v38 = vadd.f32 %v2157_v14, %v2068_v16 }
 0x351   : > { %v2182_v19 = vadd.f32 %v3839_v8, %v2170_v38 }
 0x353   : > { %v2190_v50 = vmax.f32 %v2182_v19, 0.0 }
 0x355   : > { %2199 = vst.msk [vmem:[%s3844_s28 + $0x28] sm:$0xff] %vm2193_vm7, %v2190_v50 }
 0x356   : > { %v2160_v48 = vpop.f32.mrf.mxu1 }
 0x357   : > { %v2171_v52 = vadd.f32 %v2160_v48, %v2069_v11 }
 0x359   : > { %v2183_v45 = vadd.f32 %v3839_v8, %v2171_v52 }
 0x35b   : > { %v2191_v49 = vmax.f32 %v2183_v45, 0.0 }
 0x35d   : > { %2200 = vst.msk [vmem:[%s3844_s28 + $0x30] sm:$0xff] %vm2193_vm7, %v2191_v49 }
 0x35e   : > { %v2162_v60 = vpop.f32.mrf.mxu1 }
 0x35f   : > { %v2172_v17 = vadd.f32 %v2162_v60, %v2070_v13 }
 0x361   : > { %v2184_v62 = vadd.f32 %v3839_v8, %v2172_v17 }
 0x363   : > { %v2192_v26 = vmax.f32 %v2184_v62, 0.0 }
 0x365   : > { %2201 = vst.msk [vmem:[%s3844_s28 + $0x38] sm:$0xff] %vm2193_vm7, %v2192_v26 }
 0x366   : > { %2987 = shalt.err (!%p2984_p4)
}
 0x367   : > { %s3033_s12 = smov 128  }
 0x368   : > { %2878 = dma.vmem_to_hbm [thread:$0]  (%p3114_p11), %s2216_s23, 1024, %s2218_s25, %s2203_s22, %s3033_s12, %s3033_s12, %s3032_s14  }
 0x369 PF: > { %s2232_s28 = sand.u32 1, %s3014_s18   ;;  %p3936_p7 = scmp.ge.s32.totalorder %s3026_s21, 2 }
 0x36a   : > { %s2233_s9 = scalar_lea.sflag [#allocation6], %s2232_s28 }
 0x36b   : > { %p2885_p5 = pnand %p3936_p7, %p3118_p12 }
 0x36d   : > { %p2886_p8 = pneg %p2885_p5 }
 0x36f   : > { %3009 = dma.done.wait (%p2886_p8), %s2233_s9, 1024  }
 0x370   : > { %3011 = vsyncadd (%p2886_p8), %s2233_s9, 4294966272  ;;  %p18_p10 = scmp.ge.s32.totalorder %s3089_s24, 4   ;;  %s3937_s18 = smov %s3018_s19 }
 0x371   : > { %s3938_s19 = smov %s3022_s20  ;;  %s3939_s20 = smov %s3101_s27 }
 0x372   : > { %s3940_s21 = smov %s3089_s24  ;;  %20 = sbr.rel (!%p18_p10) target bundleno = 5 (0x5), region = 112 }
 0x377   :  { %2239 = vsyncpa [#allocation5], 1 }
 0x378   :  { %2241 = vsyncpa [#allocation5 + $0x1], 1 }
 0x379   :  { %2242 = vsyncpa [#allocation6], 1 }
 0x37a   :  { %2244 = vsyncpa [#allocation6 + $0x1], 1 }

</bundles_post_ra>
